<compile_context>
chip_gen: v5e
topology: v5e:2x2
jax: 0.10.0
libtpu: 0.0.40
codegen_flags: <defaults>
</compile_context>

<pallas_src>
import functools

import jax
import jax.numpy as jnp
from jax import lax
from jax.experimental import pallas as pl
from jax.experimental.pallas import tpu as pltpu


def _conv3x3_acc(center, w_ref, acc, *, W, HW, col):
    """Accumulate a 3x3 'SAME' conv contribution in the transposed layout.

    center : (C, H*W) f32 value — channels on sublanes, flattened spatial on lanes.
    w_ref  : (3, 3, Co, C) ref   — BN-scaled weights, index order (kh, kw, Co, Cin).
    acc    : (Co, H*W) f32 accumulator (returned updated).
    col    : (1, H*W) int32, lane index modulo W (width-edge mask helper).
    """
    C = center.shape[0]
    zc = jnp.zeros((C, 1), jnp.float32)
    zrow = jnp.zeros((C, W), jnp.float32)

    # Width-shifted copies (built once per kw tap, reused for all three kh taps).
    shifted_w = (
        # kw=0: value at (i, j) is src[i, j-1]; zero at j == 0 (and at the lane wrap).
        jnp.where(col == 0, 0.0,
                  jnp.concatenate([zc, center[:, :HW - 1]], axis=1)),
        # kw=1: the tile itself.
        center,
        # kw=2: value at (i, j) is src[i, j+1]; zero at j == W-1.
        jnp.where(col == W - 1, 0.0,
                  jnp.concatenate([center[:, 1:], zc], axis=1)),
    )

    for dw in range(3):
        mid = shifted_w[dw]
        for dh in range(3):
            if dh == 0:
                # value at (i, j) is src[i-1, j+dw-1]; zero for i == 0.
                tap = jnp.concatenate([zrow, mid[:, :HW - W]], axis=1)
            elif dh == 1:
                tap = mid
            else:
                # value at (i, j) is src[i+1, j+dw-1]; zero for i == H-1.
                tap = jnp.concatenate([mid[:, W:], zrow], axis=1)
            acc = acc + jnp.dot(w_ref[dh, dw], tap,
                                preferred_element_type=jnp.float32)
    return acc


def _decoder_block_kernel(has_skip, W, *refs):
    """One batch element per grid step (transposed / channel-major layout).

    x_ref    : (1, Cin, H*W)   upsampled input, flattened spatial on lanes
    skip_ref : (1, Cs,  H*W)   skip connection (only if has_skip)
    w1x_ref  : (3, 3, Co, Cin) conv1 weights for the x channels (BN1 folded)
    w1s_ref  : (3, 3, Co, Cs)  conv1 weights for the skip channels (only if has_skip)
    b1/b2    : (Co, 1)         folded BN biases
    w2_ref   : (3, 3, Co, Co)  conv2 weights (BN2 folded)
    out_ref  : (1, Co, H*W)
    """
    if has_skip:
        (x_ref, skip_ref, w1x_ref, w1s_ref, b1_ref, w2_ref, b2_ref, out_ref) = refs
    else:
        (x_ref, w1x_ref, b1_ref, w2_ref, b2_ref, out_ref) = refs
        skip_ref = w1s_ref = None

    _, Co, HW = out_ref.shape
    col = lax.broadcasted_iota(jnp.int32, (1, HW), 1) % W

    # ---- conv1 (3x3, pad=1, no bias) + folded BN1 + ReLU ----
    # Channel concat with skip is realised for free via the split weights.
    acc = jnp.zeros((Co, HW), jnp.float32)
    acc = _conv3x3_acc(x_ref[0], w1x_ref, acc, W=W, HW=HW, col=col)
    if has_skip:
        acc = _conv3x3_acc(skip_ref[0], w1s_ref, acc, W=W, HW=HW, col=col)
    y1 = jnp.maximum(acc + b1_ref[...], 0.0)                 # (Co, HW)

    # ---- conv2 (3x3, pad=1, no bias) + folded BN2 + ReLU ----
    acc = jnp.zeros((Co, HW), jnp.float32)
    acc = _conv3x3_acc(y1, w2_ref, acc, W=W, HW=HW, col=col)
    y2 = jnp.maximum(acc + b2_ref[...], 0.0)

    out_ref[0] = y2.astype(out_ref.dtype)                    # lane-dense store


def _run_pallas(x_flat, skip_flat, w1x_t, w1s_t, b1, w2_t, b2, *, W):
    N, Cin, HW = x_flat.shape
    Co = w2_t.shape[2]
    has_skip = skip_flat is not None

    inputs = [x_flat]
    in_specs = [pl.BlockSpec((1, Cin, HW), lambda n: (n, 0, 0))]
    if has_skip:
        Cs = skip_flat.shape[1]
        inputs.append(skip_flat)
        in_specs.append(pl.BlockSpec((1, Cs, HW), lambda n: (n, 0, 0)))

    # Constant-index (weight/bias) blocks.
    inputs.append(w1x_t)
    in_specs.append(pl.BlockSpec(w1x_t.shape, lambda n: (0, 0, 0, 0)))
    if has_skip:
        inputs.append(w1s_t)
        in_specs.append(pl.BlockSpec(w1s_t.shape, lambda n: (0, 0, 0, 0)))
    inputs += [b1, w2_t, b2]
    in_specs += [
        pl.BlockSpec(b1.shape, lambda n: (0, 0)),
        pl.BlockSpec(w2_t.shape, lambda n: (0, 0, 0, 0)),
        pl.BlockSpec(b2.shape, lambda n: (0, 0)),
    ]

    # Size the VMEM limit from the real footprint (double-buffered blocks +
    # weights + generous slack for in-register tap values / compiler spills).
    cs = skip_flat.shape[1] if has_skip else 0
    block_elems = (Cin + cs + Co) * HW
    weight_elems = sum(int(a.size) for a in (w1x_t, w2_t, b1, b2))
    weight_elems += int(w1s_t.size) if has_skip else 0
    live_elems = 16 * max(Cin, cs, Co) * HW
    vmem_bytes = 4 * (2 * (block_elems + weight_elems) + live_elems)
    vmem_limit = int(min(128 * 1024 * 1024, max(32 * 1024 * 1024, 2 * vmem_bytes)))

    kernel = functools.partial(_decoder_block_kernel, has_skip, W)
    return pl.pallas_call(
        kernel,
        out_shape=jax.ShapeDtypeStruct((N, Co, HW), jnp.float32),
        grid_spec=pltpu.PrefetchScalarGridSpec(
            num_scalar_prefetch=0,
            grid=(N,),
            in_specs=in_specs,
            out_specs=pl.BlockSpec((1, Co, HW), lambda n: (n, 0, 0)),
        ),
        compiler_params=pltpu.CompilerParams(
            dimension_semantics=("parallel",),
            vmem_limit_bytes=vmem_limit,
        ),
    )(*inputs)


def _fold_bn(gamma, beta, mean, var, eps=1e-5):
    scale = gamma / jnp.sqrt(var + eps)
    return scale, beta - mean * scale


def _prep_weights(w_hwio, scale):
    """Fold BN scale into HWIO conv weights and transpose to (kh, kw, Co, Cin)."""
    return jnp.transpose(w_hwio * scale, (0, 1, 3, 2))


def decoder_block_forward(x_nchw, skip_nchw, params, eps=1e-5):
    """Forward pass matching DecoderBlock.forward (attention_type=None).

    x_nchw    : (N, C_in, h, w)
    skip_nchw : (N, C_skip, H, W) or None
    params    : {"w1","w2","bn1","bn2"}  (raw HWIO conv weights + BN tuples)
    returns   : (N, C_out, H, W)  NCHW, like PyTorch.
    """
    x_nchw = x_nchw.astype(jnp.float32)
    N, Cin, h, w = x_nchw.shape
    w1 = params["w1"].astype(jnp.float32)
    w2 = params["w2"].astype(jnp.float32)
    Co = w1.shape[-1]
    s1, b1 = _fold_bn(*params["bn1"], eps=eps)
    s2, b2 = _fold_bn(*params["bn2"], eps=eps)

    if skip_nchw is not None:
        _, Cs, H, W = skip_nchw.shape
        assert H % h == 0 and W % w == 0, "nearest upsample needs integer ratios"
        assert w1.shape[2] == Cin + Cs
        skip_flat = skip_nchw.astype(jnp.float32).reshape(N, Cs, H * W)
        w1x_t = _prep_weights(w1[:, :, :Cin, :], s1)
        w1s_t = _prep_weights(w1[:, :, Cin:, :], s1)
    else:
        # scale_factor=2 path (module built with skip_channels == 0) — specialized,
        # no dummy zero-skip tensor and no dead matmuls.
        H, W = 2 * h, 2 * w
        assert w1.shape[2] == Cin
        skip_flat = None
        w1x_t = _prep_weights(w1, s1)
        w1s_t = None

    # Nearest-neighbour upsample of the SMALL low-res x, then a free reshape to the
    # kernel's channel-major flattened-spatial layout (no NHWC transposes anywhere).
    rh, rw = H // h, W // w
    x_up = x_nchw
    if rh > 1:
        x_up = jnp.repeat(x_up, rh, axis=2)
    if rw > 1:
        x_up = jnp.repeat(x_up, rw, axis=3)
    x_flat = x_up.reshape(N, Cin, H * W)

    w2_t = _prep_weights(w2, s2)
    out_flat = _run_pallas(x_flat, skip_flat, w1x_t, w1s_t,
                           b1.reshape(Co, 1), w2_t, b2.reshape(Co, 1), W=W)
    return out_flat.reshape(N, Co, H, W)


def _make_params(key, in_channels, skip_channels, out_channels):
    cc = in_channels + skip_channels
    co = out_channels
    ks = jax.random.split(key, 10)
    w1 = jax.random.normal(ks[0], (3, 3, cc, co), jnp.float32) * 0.1
    w2 = jax.random.normal(ks[1], (3, 3, co, co), jnp.float32) * 0.1
    bn1 = (jax.random.uniform(ks[2], (co,), jnp.float32, 0.5, 1.5),
           jax.random.normal(ks[3], (co,), jnp.float32) * 0.1,
           jax.random.normal(ks[4], (co,), jnp.float32) * 0.1,
           jax.random.uniform(ks[5], (co,), jnp.float32, 0.5, 1.5))
    bn2 = (jax.random.uniform(ks[6], (co,), jnp.float32, 0.5, 1.5),
           jax.random.normal(ks[7], (co,), jnp.float32) * 0.1,
           jax.random.normal(ks[8], (co,), jnp.float32) * 0.1,
           jax.random.uniform(ks[9], (co,), jnp.float32, 0.5, 1.5))
    return {"w1": w1, "w2": w2, "bn1": bn1, "bn2": bn2}


def _reference_forward(x_nchw, skip_nchw, params):
    """Pure-JAX reference (lax conv + inference BN) for correctness checking."""
    if skip_nchw is not None:
        H, W = skip_nchw.shape[2], skip_nchw.shape[3]
    else:
        H, W = 2 * x_nchw.shape[2], 2 * x_nchw.shape[3]
    rh = H // x_nchw.shape[2]
    rw = W // x_nchw.shape[3]
    x_up = jnp.repeat(jnp.repeat(x_nchw, rh, axis=2), rw, axis=3)
    if skip_nchw is not None:
        x_cat = jnp.concatenate([x_up, skip_nchw], axis=1)
    else:
        x_cat = x_up
    y = jnp.transpose(x_cat, (0, 2, 3, 1)).astype(jnp.float32)

    def conv_bn_relu(y, w, bn):
        gamma, beta, mean, var = bn
        y = lax.conv_general_dilated(
            y, w, (1, 1), "SAME", dimension_numbers=("NHWC", "HWIO", "NHWC"))
        y = (y - mean) * (gamma / jnp.sqrt(var + 1e-5)) + beta
        return jnp.maximum(y, 0.0)

    y = conv_bn_relu(y, params["w1"], params["bn1"])
    y = conv_bn_relu(y, params["w2"], params["bn2"])
    return jnp.transpose(y, (0, 3, 1, 2))


if __name__ == "__main__":
    key = jax.random.PRNGKey(0)
    k_x, k_skip, k_p, k_p2 = jax.random.split(key, 4)

    N = 2
    in_channels, skip_channels, out_channels = 4, 4, 8
    h, w = 8, 8            # low-res decoder input
    H, W = 16, 16          # skip-connection resolution

    x = jax.random.normal(k_x, (N, in_channels, h, w), jnp.float32)
    skip = jax.random.normal(k_skip, (N, skip_channels, H, W), jnp.float32)
    params = _make_params(k_p, in_channels, skip_channels, out_channels)

    # Path 1: with skip connection (upsample to skip size + channel concat).
    out = jax.block_until_ready(decoder_block_forward(x, skip, params))
    ref = jax.block_until_ready(_reference_forward(x, skip, params))
    assert out.shape == (N, out_channels, H, W), out.shape
    if not jnp.allclose(out, ref, atol=2e-4, rtol=2e-4):
        max_err = jnp.max(jnp.abs(out - ref))
        raise AssertionError(f"Pallas output (skip path) mismatch (max err {max_err})")

    # Path 2: skip=None (scale_factor=2 nearest upsample, specialized kernel).
    params2 = _make_params(k_p2, in_channels, 0, out_channels)
    out2 = jax.block_until_ready(decoder_block_forward(x, None, params2))
    ref2 = jax.block_until_ready(_reference_forward(x, None, params2))
    assert out2.shape == (N, out_channels, 2 * h, 2 * w), out2.shape
    if not jnp.allclose(out2, ref2, atol=2e-4, rtol=2e-4):
        max_err = jnp.max(jnp.abs(out2 - ref2))
        raise AssertionError(f"Pallas output (no-skip path) mismatch (max err {max_err})")

    print("KERNEL_OK")
</pallas_src>

<mosaic_0001>
module attributes {stable_mosaic.version = 11 : i64} {
  func.func @_decoder_block_kernel(%arg0: i32, %arg1: memref<1x4x256xf32, #tpu.memory_space<vmem>>, %arg2: memref<1x4x256xf32, #tpu.memory_space<vmem>>, %arg3: memref<3x3x8x4xf32, #tpu.memory_space<vmem>>, %arg4: memref<3x3x8x4xf32, #tpu.memory_space<vmem>>, %arg5: memref<8x1xf32, #tpu.memory_space<vmem>>, %arg6: memref<3x3x8x8xf32, #tpu.memory_space<vmem>>, %arg7: memref<8x1xf32, #tpu.memory_space<vmem>>, %arg8: memref<1x8x256xf32, #tpu.memory_space<vmem>>) attributes {dimension_semantics = [#tpu.dimension_semantics<parallel>], iteration_bounds = array<i64: 2>, scalar_prefetch = 0 : i64, scratch_operands = 0 : i64, tpu.core_type = #tpu.core_type<tc>, window_params = [{transform_indices = @transform_0, window_bounds = array<i64: 1, 4, 256>}, {transform_indices = @transform_1, window_bounds = array<i64: 1, 4, 256>}, {pipeline_mode = #tpu.pipeline_mode<synchronous>, transform_indices = @transform_2, window_bounds = array<i64: 3, 3, 8, 4>}, {pipeline_mode = #tpu.pipeline_mode<synchronous>, transform_indices = @transform_3, window_bounds = array<i64: 3, 3, 8, 4>}, {pipeline_mode = #tpu.pipeline_mode<synchronous>, transform_indices = @transform_4, window_bounds = array<i64: 8, 1>}, {pipeline_mode = #tpu.pipeline_mode<synchronous>, transform_indices = @transform_5, window_bounds = array<i64: 3, 3, 8, 8>}, {pipeline_mode = #tpu.pipeline_mode<synchronous>, transform_indices = @transform_6, window_bounds = array<i64: 8, 1>}, {transform_indices = @transform_7, window_bounds = array<i64: 1, 8, 256>}]} {
    %0 = tpu.iota {dimensions = array<i32: 1>} : vector<1x256xi32>
    %c16_i32 = arith.constant 16 : i32
    %c0_i32 = arith.constant 0 : i32
    %1 = arith.cmpi eq, %c16_i32, %c0_i32 : i32
    %c1_i32 = arith.constant 1 : i32
    %2 = arith.select %1, %c1_i32, %c16_i32 : i32
    %3 = vector.broadcast %2 : i32 to vector<1x256xi32>
    %4 = arith.remsi %0, %3 : vector<1x256xi32>
    %c0_i32_0 = arith.constant 0 : i32
    %5 = vector.broadcast %c0_i32_0 : i32 to vector<1x256xi32>
    %6 = arith.cmpi ne, %4, %5 : vector<1x256xi32>
    %c0_i32_1 = arith.constant 0 : i32
    %7 = vector.broadcast %c0_i32_1 : i32 to vector<1x256xi32>
    %8 = arith.cmpi slt, %4, %7 : vector<1x256xi32>
    %c0_i32_2 = arith.constant 0 : i32
    %9 = arith.cmpi slt, %2, %c0_i32_2 : i32
    %10 = vector.broadcast %9 : i1 to vector<1x256xi1>
    %11 = vector.broadcast %10 : vector<1x256xi1> to vector<1x256xi1>
    %12 = arith.xori %8, %11 : vector<1x256xi1>
    %13 = arith.andi %12, %6 : vector<1x256xi1>
    %14 = vector.broadcast %2 : i32 to vector<1x256xi32>
    %15 = arith.addi %4, %14 : vector<1x256xi32>
    %16 = arith.select %13, %15, %4 : vector<1x256xi1>, vector<1x256xi32>
    %cst = arith.constant 0.000000e+00 : f32
    %17 = vector.broadcast %cst : f32 to vector<8x256xf32>
    %c0 = arith.constant 0 : index
    %c0_3 = arith.constant 0 : index
    %c0_4 = arith.constant 0 : index
    %18 = vector.load %arg1[%c0, %c0_3, %c0_4] : memref<1x4x256xf32, #tpu.memory_space<vmem>>, vector<1x4x256xf32>
    %19 = vector.shape_cast %18 : vector<1x4x256xf32> to vector<4x256xf32>
    %cst_5 = arith.constant 0.000000e+00 : f32
    %20 = vector.broadcast %cst_5 : f32 to vector<4x1xf32>
    %cst_6 = arith.constant 0.000000e+00 : f32
    %21 = vector.broadcast %cst_6 : f32 to vector<4x16xf32>
    %c0_i32_7 = arith.constant 0 : i32
    %22 = vector.broadcast %c0_i32_7 : i32 to vector<1x256xi32>
    %23 = arith.cmpi eq, %16, %22 : vector<1x256xi32>
    %24 = vector.extract_strided_slice %19 {offsets = [0, 0], sizes = [4, 255], strides = [1, 1]} : vector<4x256xf32> to vector<4x255xf32>
    %25 = tpu.concatenate %20, %24 in 1 : vector<4x1xf32>, vector<4x255xf32> -> vector<4x256xf32>
    %cst_8 = arith.constant 0.000000e+00 : f32
    %26 = vector.shape_cast %23 : vector<1x256xi1> to vector<1x256xi1>
    %27 = vector.broadcast %26 : vector<1x256xi1> to vector<4x256xi1>
    %28 = vector.broadcast %cst_8 : f32 to vector<4x256xf32>
    %29 = arith.select %27, %28, %25 : vector<4x256xi1>, vector<4x256xf32>
    %c15_i32 = arith.constant 15 : i32
    %30 = vector.broadcast %c15_i32 : i32 to vector<1x256xi32>
    %31 = arith.cmpi eq, %16, %30 : vector<1x256xi32>
    %32 = vector.extract_strided_slice %19 {offsets = [0, 1], sizes = [4, 255], strides = [1, 1]} : vector<4x256xf32> to vector<4x255xf32>
    %33 = tpu.concatenate %32, %20 in 1 : vector<4x255xf32>, vector<4x1xf32> -> vector<4x256xf32>
    %cst_9 = arith.constant 0.000000e+00 : f32
    %34 = vector.shape_cast %31 : vector<1x256xi1> to vector<1x256xi1>
    %35 = vector.broadcast %34 : vector<1x256xi1> to vector<4x256xi1>
    %36 = vector.broadcast %cst_9 : f32 to vector<4x256xf32>
    %37 = arith.select %35, %36, %33 : vector<4x256xi1>, vector<4x256xf32>
    %38 = vector.extract_strided_slice %29 {offsets = [0, 0], sizes = [4, 240], strides = [1, 1]} : vector<4x256xf32> to vector<4x240xf32>
    %39 = tpu.concatenate %21, %38 in 1 : vector<4x16xf32>, vector<4x240xf32> -> vector<4x256xf32>
    %c0_10 = arith.constant 0 : index
    %c0_11 = arith.constant 0 : index
    %c0_12 = arith.constant 0 : index
    %c0_13 = arith.constant 0 : index
    %40 = vector.load %arg3[%c0_10, %c0_11, %c0_12, %c0_13] : memref<3x3x8x4xf32, #tpu.memory_space<vmem>>, vector<1x1x8x4xf32>
    %41 = vector.shape_cast %40 : vector<1x1x8x4xf32> to vector<8x4xf32>
    %cst_14 = arith.constant dense<0.000000e+00> : vector<8x256xf32>
    %42 = tpu.matmul %41, %39, %cst_14 {dimension_numbers = #tpu.dot_dimension_numbers<[1], [0], [0], [1], [0, 0, 1, 1], [], []>} : vector<8x4xf32>, vector<4x256xf32>, vector<8x256xf32> -> vector<8x256xf32>
    %43 = arith.addf %17, %42 : vector<8x256xf32>
    %c1 = arith.constant 1 : index
    %c0_15 = arith.constant 0 : index
    %c0_16 = arith.constant 0 : index
    %c0_17 = arith.constant 0 : index
    %44 = vector.load %arg3[%c1, %c0_15, %c0_16, %c0_17] : memref<3x3x8x4xf32, #tpu.memory_space<vmem>>, vector<1x1x8x4xf32>
    %45 = vector.shape_cast %44 : vector<1x1x8x4xf32> to vector<8x4xf32>
    %cst_18 = arith.constant dense<0.000000e+00> : vector<8x256xf32>
    %46 = tpu.matmul %45, %29, %cst_18 {dimension_numbers = #tpu.dot_dimension_numbers<[1], [0], [0], [1], [0, 0, 1, 1], [], []>} : vector<8x4xf32>, vector<4x256xf32>, vector<8x256xf32> -> vector<8x256xf32>
    %47 = arith.addf %43, %46 : vector<8x256xf32>
    %48 = vector.extract_strided_slice %29 {offsets = [0, 16], sizes = [4, 240], strides = [1, 1]} : vector<4x256xf32> to vector<4x240xf32>
    %49 = tpu.concatenate %48, %21 in 1 : vector<4x240xf32>, vector<4x16xf32> -> vector<4x256xf32>
    %c2 = arith.constant 2 : index
    %c0_19 = arith.constant 0 : index
    %c0_20 = arith.constant 0 : index
    %c0_21 = arith.constant 0 : index
    %50 = vector.load %arg3[%c2, %c0_19, %c0_20, %c0_21] : memref<3x3x8x4xf32, #tpu.memory_space<vmem>>, vector<1x1x8x4xf32>
    %51 = vector.shape_cast %50 : vector<1x1x8x4xf32> to vector<8x4xf32>
    %cst_22 = arith.constant dense<0.000000e+00> : vector<8x256xf32>
    %52 = tpu.matmul %51, %49, %cst_22 {dimension_numbers = #tpu.dot_dimension_numbers<[1], [0], [0], [1], [0, 0, 1, 1], [], []>} : vector<8x4xf32>, vector<4x256xf32>, vector<8x256xf32> -> vector<8x256xf32>
    %53 = arith.addf %47, %52 : vector<8x256xf32>
    %54 = vector.extract_strided_slice %19 {offsets = [0, 0], sizes = [4, 240], strides = [1, 1]} : vector<4x256xf32> to vector<4x240xf32>
    %55 = tpu.concatenate %21, %54 in 1 : vector<4x16xf32>, vector<4x240xf32> -> vector<4x256xf32>
    %c0_23 = arith.constant 0 : index
    %c1_24 = arith.constant 1 : index
    %c0_25 = arith.constant 0 : index
    %c0_26 = arith.constant 0 : index
    %56 = vector.load %arg3[%c0_23, %c1_24, %c0_25, %c0_26] : memref<3x3x8x4xf32, #tpu.memory_space<vmem>>, vector<1x1x8x4xf32>
    %57 = vector.shape_cast %56 : vector<1x1x8x4xf32> to vector<8x4xf32>
    %cst_27 = arith.constant dense<0.000000e+00> : vector<8x256xf32>
    %58 = tpu.matmul %57, %55, %cst_27 {dimension_numbers = #tpu.dot_dimension_numbers<[1], [0], [0], [1], [0, 0, 1, 1], [], []>} : vector<8x4xf32>, vector<4x256xf32>, vector<8x256xf32> -> vector<8x256xf32>
    %59 = arith.addf %53, %58 : vector<8x256xf32>
    %c1_28 = arith.constant 1 : index
    %c1_29 = arith.constant 1 : index
    %c0_30 = arith.constant 0 : index
    %c0_31 = arith.constant 0 : index
    %60 = vector.load %arg3[%c1_28, %c1_29, %c0_30, %c0_31] : memref<3x3x8x4xf32, #tpu.memory_space<vmem>>, vector<1x1x8x4xf32>
    %61 = vector.shape_cast %60 : vector<1x1x8x4xf32> to vector<8x4xf32>
    %cst_32 = arith.constant dense<0.000000e+00> : vector<8x256xf32>
    %62 = tpu.matmul %61, %19, %cst_32 {dimension_numbers = #tpu.dot_dimension_numbers<[1], [0], [0], [1], [0, 0, 1, 1], [], []>} : vector<8x4xf32>, vector<4x256xf32>, vector<8x256xf32> -> vector<8x256xf32>
    %63 = arith.addf %59, %62 : vector<8x256xf32>
    %64 = vector.extract_strided_slice %19 {offsets = [0, 16], sizes = [4, 240], strides = [1, 1]} : vector<4x256xf32> to vector<4x240xf32>
    %65 = tpu.concatenate %64, %21 in 1 : vector<4x240xf32>, vector<4x16xf32> -> vector<4x256xf32>
    %c2_33 = arith.constant 2 : index
    %c1_34 = arith.constant 1 : index
    %c0_35 = arith.constant 0 : index
    %c0_36 = arith.constant 0 : index
    %66 = vector.load %arg3[%c2_33, %c1_34, %c0_35, %c0_36] : memref<3x3x8x4xf32, #tpu.memory_space<vmem>>, vector<1x1x8x4xf32>
    %67 = vector.shape_cast %66 : vector<1x1x8x4xf32> to vector<8x4xf32>
    %cst_37 = arith.constant dense<0.000000e+00> : vector<8x256xf32>
    %68 = tpu.matmul %67, %65, %cst_37 {dimension_numbers = #tpu.dot_dimension_numbers<[1], [0], [0], [1], [0, 0, 1, 1], [], []>} : vector<8x4xf32>, vector<4x256xf32>, vector<8x256xf32> -> vector<8x256xf32>
    %69 = arith.addf %63, %68 : vector<8x256xf32>
    %70 = vector.extract_strided_slice %37 {offsets = [0, 0], sizes = [4, 240], strides = [1, 1]} : vector<4x256xf32> to vector<4x240xf32>
    %71 = tpu.concatenate %21, %70 in 1 : vector<4x16xf32>, vector<4x240xf32> -> vector<4x256xf32>
    %c0_38 = arith.constant 0 : index
    %c2_39 = arith.constant 2 : index
    %c0_40 = arith.constant 0 : index
    %c0_41 = arith.constant 0 : index
    %72 = vector.load %arg3[%c0_38, %c2_39, %c0_40, %c0_41] : memref<3x3x8x4xf32, #tpu.memory_space<vmem>>, vector<1x1x8x4xf32>
    %73 = vector.shape_cast %72 : vector<1x1x8x4xf32> to vector<8x4xf32>
    %cst_42 = arith.constant dense<0.000000e+00> : vector<8x256xf32>
    %74 = tpu.matmul %73, %71, %cst_42 {dimension_numbers = #tpu.dot_dimension_numbers<[1], [0], [0], [1], [0, 0, 1, 1], [], []>} : vector<8x4xf32>, vector<4x256xf32>, vector<8x256xf32> -> vector<8x256xf32>
    %75 = arith.addf %69, %74 : vector<8x256xf32>
    %c1_43 = arith.constant 1 : index
    %c2_44 = arith.constant 2 : index
    %c0_45 = arith.constant 0 : index
    %c0_46 = arith.constant 0 : index
    %76 = vector.load %arg3[%c1_43, %c2_44, %c0_45, %c0_46] : memref<3x3x8x4xf32, #tpu.memory_space<vmem>>, vector<1x1x8x4xf32>
    %77 = vector.shape_cast %76 : vector<1x1x8x4xf32> to vector<8x4xf32>
    %cst_47 = arith.constant dense<0.000000e+00> : vector<8x256xf32>
    %78 = tpu.matmul %77, %37, %cst_47 {dimension_numbers = #tpu.dot_dimension_numbers<[1], [0], [0], [1], [0, 0, 1, 1], [], []>} : vector<8x4xf32>, vector<4x256xf32>, vector<8x256xf32> -> vector<8x256xf32>
    %79 = arith.addf %75, %78 : vector<8x256xf32>
    %80 = vector.extract_strided_slice %37 {offsets = [0, 16], sizes = [4, 240], strides = [1, 1]} : vector<4x256xf32> to vector<4x240xf32>
    %81 = tpu.concatenate %80, %21 in 1 : vector<4x240xf32>, vector<4x16xf32> -> vector<4x256xf32>
    %c2_48 = arith.constant 2 : index
    %c2_49 = arith.constant 2 : index
    %c0_50 = arith.constant 0 : index
    %c0_51 = arith.constant 0 : index
    %82 = vector.load %arg3[%c2_48, %c2_49, %c0_50, %c0_51] : memref<3x3x8x4xf32, #tpu.memory_space<vmem>>, vector<1x1x8x4xf32>
    %83 = vector.shape_cast %82 : vector<1x1x8x4xf32> to vector<8x4xf32>
    %cst_52 = arith.constant dense<0.000000e+00> : vector<8x256xf32>
    %84 = tpu.matmul %83, %81, %cst_52 {dimension_numbers = #tpu.dot_dimension_numbers<[1], [0], [0], [1], [0, 0, 1, 1], [], []>} : vector<8x4xf32>, vector<4x256xf32>, vector<8x256xf32> -> vector<8x256xf32>
    %85 = arith.addf %79, %84 : vector<8x256xf32>
    %c0_53 = arith.constant 0 : index
    %c0_54 = arith.constant 0 : index
    %c0_55 = arith.constant 0 : index
    %86 = vector.load %arg2[%c0_53, %c0_54, %c0_55] : memref<1x4x256xf32, #tpu.memory_space<vmem>>, vector<1x4x256xf32>
    %87 = vector.shape_cast %86 : vector<1x4x256xf32> to vector<4x256xf32>
    %cst_56 = arith.constant 0.000000e+00 : f32
    %88 = vector.broadcast %cst_56 : f32 to vector<4x1xf32>
    %cst_57 = arith.constant 0.000000e+00 : f32
    %89 = vector.broadcast %cst_57 : f32 to vector<4x16xf32>
    %c0_i32_58 = arith.constant 0 : i32
    %90 = vector.broadcast %c0_i32_58 : i32 to vector<1x256xi32>
    %91 = arith.cmpi eq, %16, %90 : vector<1x256xi32>
    %92 = vector.extract_strided_slice %87 {offsets = [0, 0], sizes = [4, 255], strides = [1, 1]} : vector<4x256xf32> to vector<4x255xf32>
    %93 = tpu.concatenate %88, %92 in 1 : vector<4x1xf32>, vector<4x255xf32> -> vector<4x256xf32>
    %cst_59 = arith.constant 0.000000e+00 : f32
    %94 = vector.shape_cast %91 : vector<1x256xi1> to vector<1x256xi1>
    %95 = vector.broadcast %94 : vector<1x256xi1> to vector<4x256xi1>
    %96 = vector.broadcast %cst_59 : f32 to vector<4x256xf32>
    %97 = arith.select %95, %96, %93 : vector<4x256xi1>, vector<4x256xf32>
    %c15_i32_60 = arith.constant 15 : i32
    %98 = vector.broadcast %c15_i32_60 : i32 to vector<1x256xi32>
    %99 = arith.cmpi eq, %16, %98 : vector<1x256xi32>
    %100 = vector.extract_strided_slice %87 {offsets = [0, 1], sizes = [4, 255], strides = [1, 1]} : vector<4x256xf32> to vector<4x255xf32>
    %101 = tpu.concatenate %100, %88 in 1 : vector<4x255xf32>, vector<4x1xf32> -> vector<4x256xf32>
    %cst_61 = arith.constant 0.000000e+00 : f32
    %102 = vector.shape_cast %99 : vector<1x256xi1> to vector<1x256xi1>
    %103 = vector.broadcast %102 : vector<1x256xi1> to vector<4x256xi1>
    %104 = vector.broadcast %cst_61 : f32 to vector<4x256xf32>
    %105 = arith.select %103, %104, %101 : vector<4x256xi1>, vector<4x256xf32>
    %106 = vector.extract_strided_slice %97 {offsets = [0, 0], sizes = [4, 240], strides = [1, 1]} : vector<4x256xf32> to vector<4x240xf32>
    %107 = tpu.concatenate %89, %106 in 1 : vector<4x16xf32>, vector<4x240xf32> -> vector<4x256xf32>
    %c0_62 = arith.constant 0 : index
    %c0_63 = arith.constant 0 : index
    %c0_64 = arith.constant 0 : index
    %c0_65 = arith.constant 0 : index
    %108 = vector.load %arg4[%c0_62, %c0_63, %c0_64, %c0_65] : memref<3x3x8x4xf32, #tpu.memory_space<vmem>>, vector<1x1x8x4xf32>
    %109 = vector.shape_cast %108 : vector<1x1x8x4xf32> to vector<8x4xf32>
    %cst_66 = arith.constant dense<0.000000e+00> : vector<8x256xf32>
    %110 = tpu.matmul %109, %107, %cst_66 {dimension_numbers = #tpu.dot_dimension_numbers<[1], [0], [0], [1], [0, 0, 1, 1], [], []>} : vector<8x4xf32>, vector<4x256xf32>, vector<8x256xf32> -> vector<8x256xf32>
    %111 = arith.addf %85, %110 : vector<8x256xf32>
    %c1_67 = arith.constant 1 : index
    %c0_68 = arith.constant 0 : index
    %c0_69 = arith.constant 0 : index
    %c0_70 = arith.constant 0 : index
    %112 = vector.load %arg4[%c1_67, %c0_68, %c0_69, %c0_70] : memref<3x3x8x4xf32, #tpu.memory_space<vmem>>, vector<1x1x8x4xf32>
    %113 = vector.shape_cast %112 : vector<1x1x8x4xf32> to vector<8x4xf32>
    %cst_71 = arith.constant dense<0.000000e+00> : vector<8x256xf32>
    %114 = tpu.matmul %113, %97, %cst_71 {dimension_numbers = #tpu.dot_dimension_numbers<[1], [0], [0], [1], [0, 0, 1, 1], [], []>} : vector<8x4xf32>, vector<4x256xf32>, vector<8x256xf32> -> vector<8x256xf32>
    %115 = arith.addf %111, %114 : vector<8x256xf32>
    %116 = vector.extract_strided_slice %97 {offsets = [0, 16], sizes = [4, 240], strides = [1, 1]} : vector<4x256xf32> to vector<4x240xf32>
    %117 = tpu.concatenate %116, %89 in 1 : vector<4x240xf32>, vector<4x16xf32> -> vector<4x256xf32>
    %c2_72 = arith.constant 2 : index
    %c0_73 = arith.constant 0 : index
    %c0_74 = arith.constant 0 : index
    %c0_75 = arith.constant 0 : index
    %118 = vector.load %arg4[%c2_72, %c0_73, %c0_74, %c0_75] : memref<3x3x8x4xf32, #tpu.memory_space<vmem>>, vector<1x1x8x4xf32>
    %119 = vector.shape_cast %118 : vector<1x1x8x4xf32> to vector<8x4xf32>
    %cst_76 = arith.constant dense<0.000000e+00> : vector<8x256xf32>
    %120 = tpu.matmul %119, %117, %cst_76 {dimension_numbers = #tpu.dot_dimension_numbers<[1], [0], [0], [1], [0, 0, 1, 1], [], []>} : vector<8x4xf32>, vector<4x256xf32>, vector<8x256xf32> -> vector<8x256xf32>
    %121 = arith.addf %115, %120 : vector<8x256xf32>
    %122 = vector.extract_strided_slice %87 {offsets = [0, 0], sizes = [4, 240], strides = [1, 1]} : vector<4x256xf32> to vector<4x240xf32>
    %123 = tpu.concatenate %89, %122 in 1 : vector<4x16xf32>, vector<4x240xf32> -> vector<4x256xf32>
    %c0_77 = arith.constant 0 : index
    %c1_78 = arith.constant 1 : index
    %c0_79 = arith.constant 0 : index
    %c0_80 = arith.constant 0 : index
    %124 = vector.load %arg4[%c0_77, %c1_78, %c0_79, %c0_80] : memref<3x3x8x4xf32, #tpu.memory_space<vmem>>, vector<1x1x8x4xf32>
    %125 = vector.shape_cast %124 : vector<1x1x8x4xf32> to vector<8x4xf32>
    %cst_81 = arith.constant dense<0.000000e+00> : vector<8x256xf32>
    %126 = tpu.matmul %125, %123, %cst_81 {dimension_numbers = #tpu.dot_dimension_numbers<[1], [0], [0], [1], [0, 0, 1, 1], [], []>} : vector<8x4xf32>, vector<4x256xf32>, vector<8x256xf32> -> vector<8x256xf32>
    %127 = arith.addf %121, %126 : vector<8x256xf32>
    %c1_82 = arith.constant 1 : index
    %c1_83 = arith.constant 1 : index
    %c0_84 = arith.constant 0 : index
    %c0_85 = arith.constant 0 : index
    %128 = vector.load %arg4[%c1_82, %c1_83, %c0_84, %c0_85] : memref<3x3x8x4xf32, #tpu.memory_space<vmem>>, vector<1x1x8x4xf32>
    %129 = vector.shape_cast %128 : vector<1x1x8x4xf32> to vector<8x4xf32>
    %cst_86 = arith.constant dense<0.000000e+00> : vector<8x256xf32>
    %130 = tpu.matmul %129, %87, %cst_86 {dimension_numbers = #tpu.dot_dimension_numbers<[1], [0], [0], [1], [0, 0, 1, 1], [], []>} : vector<8x4xf32>, vector<4x256xf32>, vector<8x256xf32> -> vector<8x256xf32>
    %131 = arith.addf %127, %130 : vector<8x256xf32>
    %132 = vector.extract_strided_slice %87 {offsets = [0, 16], sizes = [4, 240], strides = [1, 1]} : vector<4x256xf32> to vector<4x240xf32>
    %133 = tpu.concatenate %132, %89 in 1 : vector<4x240xf32>, vector<4x16xf32> -> vector<4x256xf32>
    %c2_87 = arith.constant 2 : index
    %c1_88 = arith.constant 1 : index
    %c0_89 = arith.constant 0 : index
    %c0_90 = arith.constant 0 : index
    %134 = vector.load %arg4[%c2_87, %c1_88, %c0_89, %c0_90] : memref<3x3x8x4xf32, #tpu.memory_space<vmem>>, vector<1x1x8x4xf32>
    %135 = vector.shape_cast %134 : vector<1x1x8x4xf32> to vector<8x4xf32>
    %cst_91 = arith.constant dense<0.000000e+00> : vector<8x256xf32>
    %136 = tpu.matmul %135, %133, %cst_91 {dimension_numbers = #tpu.dot_dimension_numbers<[1], [0], [0], [1], [0, 0, 1, 1], [], []>} : vector<8x4xf32>, vector<4x256xf32>, vector<8x256xf32> -> vector<8x256xf32>
    %137 = arith.addf %131, %136 : vector<8x256xf32>
    %138 = vector.extract_strided_slice %105 {offsets = [0, 0], sizes = [4, 240], strides = [1, 1]} : vector<4x256xf32> to vector<4x240xf32>
    %139 = tpu.concatenate %89, %138 in 1 : vector<4x16xf32>, vector<4x240xf32> -> vector<4x256xf32>
    %c0_92 = arith.constant 0 : index
    %c2_93 = arith.constant 2 : index
    %c0_94 = arith.constant 0 : index
    %c0_95 = arith.constant 0 : index
    %140 = vector.load %arg4[%c0_92, %c2_93, %c0_94, %c0_95] : memref<3x3x8x4xf32, #tpu.memory_space<vmem>>, vector<1x1x8x4xf32>
    %141 = vector.shape_cast %140 : vector<1x1x8x4xf32> to vector<8x4xf32>
    %cst_96 = arith.constant dense<0.000000e+00> : vector<8x256xf32>
    %142 = tpu.matmul %141, %139, %cst_96 {dimension_numbers = #tpu.dot_dimension_numbers<[1], [0], [0], [1], [0, 0, 1, 1], [], []>} : vector<8x4xf32>, vector<4x256xf32>, vector<8x256xf32> -> vector<8x256xf32>
    %143 = arith.addf %137, %142 : vector<8x256xf32>
    %c1_97 = arith.constant 1 : index
    %c2_98 = arith.constant 2 : index
    %c0_99 = arith.constant 0 : index
    %c0_100 = arith.constant 0 : index
    %144 = vector.load %arg4[%c1_97, %c2_98, %c0_99, %c0_100] : memref<3x3x8x4xf32, #tpu.memory_space<vmem>>, vector<1x1x8x4xf32>
    %145 = vector.shape_cast %144 : vector<1x1x8x4xf32> to vector<8x4xf32>
    %cst_101 = arith.constant dense<0.000000e+00> : vector<8x256xf32>
    %146 = tpu.matmul %145, %105, %cst_101 {dimension_numbers = #tpu.dot_dimension_numbers<[1], [0], [0], [1], [0, 0, 1, 1], [], []>} : vector<8x4xf32>, vector<4x256xf32>, vector<8x256xf32> -> vector<8x256xf32>
    %147 = arith.addf %143, %146 : vector<8x256xf32>
    %148 = vector.extract_strided_slice %105 {offsets = [0, 16], sizes = [4, 240], strides = [1, 1]} : vector<4x256xf32> to vector<4x240xf32>
    %149 = tpu.concatenate %148, %89 in 1 : vector<4x240xf32>, vector<4x16xf32> -> vector<4x256xf32>
    %c2_102 = arith.constant 2 : index
    %c2_103 = arith.constant 2 : index
    %c0_104 = arith.constant 0 : index
    %c0_105 = arith.constant 0 : index
    %150 = vector.load %arg4[%c2_102, %c2_103, %c0_104, %c0_105] : memref<3x3x8x4xf32, #tpu.memory_space<vmem>>, vector<1x1x8x4xf32>
    %151 = vector.shape_cast %150 : vector<1x1x8x4xf32> to vector<8x4xf32>
    %cst_106 = arith.constant dense<0.000000e+00> : vector<8x256xf32>
    %152 = tpu.matmul %151, %149, %cst_106 {dimension_numbers = #tpu.dot_dimension_numbers<[1], [0], [0], [1], [0, 0, 1, 1], [], []>} : vector<8x4xf32>, vector<4x256xf32>, vector<8x256xf32> -> vector<8x256xf32>
    %153 = arith.addf %147, %152 : vector<8x256xf32>
    %c0_107 = arith.constant 0 : index
    %c0_108 = arith.constant 0 : index
    %154 = vector.load %arg5[%c0_107, %c0_108] : memref<8x1xf32, #tpu.memory_space<vmem>>, vector<8x1xf32>
    %155 = vector.broadcast %154 : vector<8x1xf32> to vector<8x256xf32>
    %156 = arith.addf %153, %155 : vector<8x256xf32>
    %cst_109 = arith.constant 0.000000e+00 : f32
    %157 = vector.broadcast %cst_109 : f32 to vector<8x256xf32>
    %158 = arith.maximumf %156, %157 : vector<8x256xf32>
    %cst_110 = arith.constant 0.000000e+00 : f32
    %159 = vector.broadcast %cst_110 : f32 to vector<8x256xf32>
    %cst_111 = arith.constant 0.000000e+00 : f32
    %160 = vector.broadcast %cst_111 : f32 to vector<8x1xf32>
    %cst_112 = arith.constant 0.000000e+00 : f32
    %161 = vector.broadcast %cst_112 : f32 to vector<8x16xf32>
    %c0_i32_113 = arith.constant 0 : i32
    %162 = vector.broadcast %c0_i32_113 : i32 to vector<1x256xi32>
    %163 = arith.cmpi eq, %16, %162 : vector<1x256xi32>
    %164 = vector.extract_strided_slice %158 {offsets = [0, 0], sizes = [8, 255], strides = [1, 1]} : vector<8x256xf32> to vector<8x255xf32>
    %165 = tpu.concatenate %160, %164 in 1 : vector<8x1xf32>, vector<8x255xf32> -> vector<8x256xf32>
    %cst_114 = arith.constant 0.000000e+00 : f32
    %166 = vector.shape_cast %163 : vector<1x256xi1> to vector<1x256xi1>
    %167 = vector.broadcast %166 : vector<1x256xi1> to vector<8x256xi1>
    %168 = vector.broadcast %cst_114 : f32 to vector<8x256xf32>
    %169 = arith.select %167, %168, %165 : vector<8x256xi1>, vector<8x256xf32>
    %c15_i32_115 = arith.constant 15 : i32
    %170 = vector.broadcast %c15_i32_115 : i32 to vector<1x256xi32>
    %171 = arith.cmpi eq, %16, %170 : vector<1x256xi32>
    %172 = vector.extract_strided_slice %158 {offsets = [0, 1], sizes = [8, 255], strides = [1, 1]} : vector<8x256xf32> to vector<8x255xf32>
    %173 = tpu.concatenate %172, %160 in 1 : vector<8x255xf32>, vector<8x1xf32> -> vector<8x256xf32>
    %cst_116 = arith.constant 0.000000e+00 : f32
    %174 = vector.shape_cast %171 : vector<1x256xi1> to vector<1x256xi1>
    %175 = vector.broadcast %174 : vector<1x256xi1> to vector<8x256xi1>
    %176 = vector.broadcast %cst_116 : f32 to vector<8x256xf32>
    %177 = arith.select %175, %176, %173 : vector<8x256xi1>, vector<8x256xf32>
    %178 = vector.extract_strided_slice %169 {offsets = [0, 0], sizes = [8, 240], strides = [1, 1]} : vector<8x256xf32> to vector<8x240xf32>
    %179 = tpu.concatenate %161, %178 in 1 : vector<8x16xf32>, vector<8x240xf32> -> vector<8x256xf32>
    %c0_117 = arith.constant 0 : index
    %c0_118 = arith.constant 0 : index
    %c0_119 = arith.constant 0 : index
    %c0_120 = arith.constant 0 : index
    %180 = vector.load %arg6[%c0_117, %c0_118, %c0_119, %c0_120] : memref<3x3x8x8xf32, #tpu.memory_space<vmem>>, vector<1x1x8x8xf32>
    %181 = vector.shape_cast %180 : vector<1x1x8x8xf32> to vector<8x8xf32>
    %cst_121 = arith.constant dense<0.000000e+00> : vector<8x256xf32>
    %182 = tpu.matmul %181, %179, %cst_121 {dimension_numbers = #tpu.dot_dimension_numbers<[1], [0], [0], [1], [0, 0, 1, 1], [], []>} : vector<8x8xf32>, vector<8x256xf32>, vector<8x256xf32> -> vector<8x256xf32>
    %183 = arith.addf %159, %182 : vector<8x256xf32>
    %c1_122 = arith.constant 1 : index
    %c0_123 = arith.constant 0 : index
    %c0_124 = arith.constant 0 : index
    %c0_125 = arith.constant 0 : index
    %184 = vector.load %arg6[%c1_122, %c0_123, %c0_124, %c0_125] : memref<3x3x8x8xf32, #tpu.memory_space<vmem>>, vector<1x1x8x8xf32>
    %185 = vector.shape_cast %184 : vector<1x1x8x8xf32> to vector<8x8xf32>
    %cst_126 = arith.constant dense<0.000000e+00> : vector<8x256xf32>
    %186 = tpu.matmul %185, %169, %cst_126 {dimension_numbers = #tpu.dot_dimension_numbers<[1], [0], [0], [1], [0, 0, 1, 1], [], []>} : vector<8x8xf32>, vector<8x256xf32>, vector<8x256xf32> -> vector<8x256xf32>
    %187 = arith.addf %183, %186 : vector<8x256xf32>
    %188 = vector.extract_strided_slice %169 {offsets = [0, 16], sizes = [8, 240], strides = [1, 1]} : vector<8x256xf32> to vector<8x240xf32>
    %189 = tpu.concatenate %188, %161 in 1 : vector<8x240xf32>, vector<8x16xf32> -> vector<8x256xf32>
    %c2_127 = arith.constant 2 : index
    %c0_128 = arith.constant 0 : index
    %c0_129 = arith.constant 0 : index
    %c0_130 = arith.constant 0 : index
    %190 = vector.load %arg6[%c2_127, %c0_128, %c0_129, %c0_130] : memref<3x3x8x8xf32, #tpu.memory_space<vmem>>, vector<1x1x8x8xf32>
    %191 = vector.shape_cast %190 : vector<1x1x8x8xf32> to vector<8x8xf32>
    %cst_131 = arith.constant dense<0.000000e+00> : vector<8x256xf32>
    %192 = tpu.matmul %191, %189, %cst_131 {dimension_numbers = #tpu.dot_dimension_numbers<[1], [0], [0], [1], [0, 0, 1, 1], [], []>} : vector<8x8xf32>, vector<8x256xf32>, vector<8x256xf32> -> vector<8x256xf32>
    %193 = arith.addf %187, %192 : vector<8x256xf32>
    %194 = vector.extract_strided_slice %158 {offsets = [0, 0], sizes = [8, 240], strides = [1, 1]} : vector<8x256xf32> to vector<8x240xf32>
    %195 = tpu.concatenate %161, %194 in 1 : vector<8x16xf32>, vector<8x240xf32> -> vector<8x256xf32>
    %c0_132 = arith.constant 0 : index
    %c1_133 = arith.constant 1 : index
    %c0_134 = arith.constant 0 : index
    %c0_135 = arith.constant 0 : index
    %196 = vector.load %arg6[%c0_132, %c1_133, %c0_134, %c0_135] : memref<3x3x8x8xf32, #tpu.memory_space<vmem>>, vector<1x1x8x8xf32>
    %197 = vector.shape_cast %196 : vector<1x1x8x8xf32> to vector<8x8xf32>
    %cst_136 = arith.constant dense<0.000000e+00> : vector<8x256xf32>
    %198 = tpu.matmul %197, %195, %cst_136 {dimension_numbers = #tpu.dot_dimension_numbers<[1], [0], [0], [1], [0, 0, 1, 1], [], []>} : vector<8x8xf32>, vector<8x256xf32>, vector<8x256xf32> -> vector<8x256xf32>
    %199 = arith.addf %193, %198 : vector<8x256xf32>
    %c1_137 = arith.constant 1 : index
    %c1_138 = arith.constant 1 : index
    %c0_139 = arith.constant 0 : index
    %c0_140 = arith.constant 0 : index
    %200 = vector.load %arg6[%c1_137, %c1_138, %c0_139, %c0_140] : memref<3x3x8x8xf32, #tpu.memory_space<vmem>>, vector<1x1x8x8xf32>
    %201 = vector.shape_cast %200 : vector<1x1x8x8xf32> to vector<8x8xf32>
    %cst_141 = arith.constant dense<0.000000e+00> : vector<8x256xf32>
    %202 = tpu.matmul %201, %158, %cst_141 {dimension_numbers = #tpu.dot_dimension_numbers<[1], [0], [0], [1], [0, 0, 1, 1], [], []>} : vector<8x8xf32>, vector<8x256xf32>, vector<8x256xf32> -> vector<8x256xf32>
    %203 = arith.addf %199, %202 : vector<8x256xf32>
    %204 = vector.extract_strided_slice %158 {offsets = [0, 16], sizes = [8, 240], strides = [1, 1]} : vector<8x256xf32> to vector<8x240xf32>
    %205 = tpu.concatenate %204, %161 in 1 : vector<8x240xf32>, vector<8x16xf32> -> vector<8x256xf32>
    %c2_142 = arith.constant 2 : index
    %c1_143 = arith.constant 1 : index
    %c0_144 = arith.constant 0 : index
    %c0_145 = arith.constant 0 : index
    %206 = vector.load %arg6[%c2_142, %c1_143, %c0_144, %c0_145] : memref<3x3x8x8xf32, #tpu.memory_space<vmem>>, vector<1x1x8x8xf32>
    %207 = vector.shape_cast %206 : vector<1x1x8x8xf32> to vector<8x8xf32>
    %cst_146 = arith.constant dense<0.000000e+00> : vector<8x256xf32>
    %208 = tpu.matmul %207, %205, %cst_146 {dimension_numbers = #tpu.dot_dimension_numbers<[1], [0], [0], [1], [0, 0, 1, 1], [], []>} : vector<8x8xf32>, vector<8x256xf32>, vector<8x256xf32> -> vector<8x256xf32>
    %209 = arith.addf %203, %208 : vector<8x256xf32>
    %210 = vector.extract_strided_slice %177 {offsets = [0, 0], sizes = [8, 240], strides = [1, 1]} : vector<8x256xf32> to vector<8x240xf32>
    %211 = tpu.concatenate %161, %210 in 1 : vector<8x16xf32>, vector<8x240xf32> -> vector<8x256xf32>
    %c0_147 = arith.constant 0 : index
    %c2_148 = arith.constant 2 : index
    %c0_149 = arith.constant 0 : index
    %c0_150 = arith.constant 0 : index
    %212 = vector.load %arg6[%c0_147, %c2_148, %c0_149, %c0_150] : memref<3x3x8x8xf32, #tpu.memory_space<vmem>>, vector<1x1x8x8xf32>
    %213 = vector.shape_cast %212 : vector<1x1x8x8xf32> to vector<8x8xf32>
    %cst_151 = arith.constant dense<0.000000e+00> : vector<8x256xf32>
    %214 = tpu.matmul %213, %211, %cst_151 {dimension_numbers = #tpu.dot_dimension_numbers<[1], [0], [0], [1], [0, 0, 1, 1], [], []>} : vector<8x8xf32>, vector<8x256xf32>, vector<8x256xf32> -> vector<8x256xf32>
    %215 = arith.addf %209, %214 : vector<8x256xf32>
    %c1_152 = arith.constant 1 : index
    %c2_153 = arith.constant 2 : index
    %c0_154 = arith.constant 0 : index
    %c0_155 = arith.constant 0 : index
    %216 = vector.load %arg6[%c1_152, %c2_153, %c0_154, %c0_155] : memref<3x3x8x8xf32, #tpu.memory_space<vmem>>, vector<1x1x8x8xf32>
    %217 = vector.shape_cast %216 : vector<1x1x8x8xf32> to vector<8x8xf32>
    %cst_156 = arith.constant dense<0.000000e+00> : vector<8x256xf32>
    %218 = tpu.matmul %217, %177, %cst_156 {dimension_numbers = #tpu.dot_dimension_numbers<[1], [0], [0], [1], [0, 0, 1, 1], [], []>} : vector<8x8xf32>, vector<8x256xf32>, vector<8x256xf32> -> vector<8x256xf32>
    %219 = arith.addf %215, %218 : vector<8x256xf32>
    %220 = vector.extract_strided_slice %177 {offsets = [0, 16], sizes = [8, 240], strides = [1, 1]} : vector<8x256xf32> to vector<8x240xf32>
    %221 = tpu.concatenate %220, %161 in 1 : vector<8x240xf32>, vector<8x16xf32> -> vector<8x256xf32>
    %c2_157 = arith.constant 2 : index
    %c2_158 = arith.constant 2 : index
    %c0_159 = arith.constant 0 : index
    %c0_160 = arith.constant 0 : index
    %222 = vector.load %arg6[%c2_157, %c2_158, %c0_159, %c0_160] : memref<3x3x8x8xf32, #tpu.memory_space<vmem>>, vector<1x1x8x8xf32>
    %223 = vector.shape_cast %222 : vector<1x1x8x8xf32> to vector<8x8xf32>
    %cst_161 = arith.constant dense<0.000000e+00> : vector<8x256xf32>
    %224 = tpu.matmul %223, %221, %cst_161 {dimension_numbers = #tpu.dot_dimension_numbers<[1], [0], [0], [1], [0, 0, 1, 1], [], []>} : vector<8x8xf32>, vector<8x256xf32>, vector<8x256xf32> -> vector<8x256xf32>
    %225 = arith.addf %219, %224 : vector<8x256xf32>
    %c0_162 = arith.constant 0 : index
    %c0_163 = arith.constant 0 : index
    %226 = vector.load %arg7[%c0_162, %c0_163] : memref<8x1xf32, #tpu.memory_space<vmem>>, vector<8x1xf32>
    %227 = vector.broadcast %226 : vector<8x1xf32> to vector<8x256xf32>
    %228 = arith.addf %225, %227 : vector<8x256xf32>
    %cst_164 = arith.constant 0.000000e+00 : f32
    %229 = vector.broadcast %cst_164 : f32 to vector<8x256xf32>
    %230 = arith.maximumf %228, %229 : vector<8x256xf32>
    %c0_165 = arith.constant 0 : index
    %c0_166 = arith.constant 0 : index
    %c0_167 = arith.constant 0 : index
    %231 = vector.load %arg8[%c0_165, %c0_166, %c0_167] : memref<1x8x256xf32, #tpu.memory_space<vmem>>, vector<1x8x256xf32>
    %232 = vector.shape_cast %231 : vector<1x8x256xf32> to vector<8x256xf32>
    %233 = vector.shape_cast %230 : vector<8x256xf32> to vector<1x8x256xf32>
    tpu.vector_store %arg8[%c0_165, %c0_166, %c0_167], %233 {strides = array<i32>} : memref<1x8x256xf32, #tpu.memory_space<vmem>>, vector<1x8x256xf32>,
    return
  }
  func.func @transform_0(%arg0: i32) -> (i32, i32, i32) {
    %c0_i32 = arith.constant 0 : i32
    %c0_i32_0 = arith.constant 0 : i32
    %c0_i32_1 = arith.constant 0 : i32
    return %arg0, %c0_i32, %c0_i32_0 : i32, i32, i32
  }
  func.func @transform_1(%arg0: i32) -> (i32, i32, i32) {
    %c0_i32 = arith.constant 0 : i32
    %c0_i32_0 = arith.constant 0 : i32
    %c0_i32_1 = arith.constant 0 : i32
    return %arg0, %c0_i32, %c0_i32_0 : i32, i32, i32
  }
  func.func @transform_2(%arg0: i32) -> (i32, i32, i32, i32) {
    %c0_i32 = arith.constant 0 : i32
    %c0_i32_0 = arith.constant 0 : i32
    %c0_i32_1 = arith.constant 0 : i32
    %c0_i32_2 = arith.constant 0 : i32
    %c0_i32_3 = arith.constant 0 : i32
    return %c0_i32, %c0_i32_0, %c0_i32_1, %c0_i32_2 : i32, i32, i32, i32
  }
  func.func @transform_3(%arg0: i32) -> (i32, i32, i32, i32) {
    %c0_i32 = arith.constant 0 : i32
    %c0_i32_0 = arith.constant 0 : i32
    %c0_i32_1 = arith.constant 0 : i32
    %c0_i32_2 = arith.constant 0 : i32
    %c0_i32_3 = arith.constant 0 : i32
    return %c0_i32, %c0_i32_0, %c0_i32_1, %c0_i32_2 : i32, i32, i32, i32
  }
  func.func @transform_4(%arg0: i32) -> (i32, i32) {
    %c0_i32 = arith.constant 0 : i32
    %c0_i32_0 = arith.constant 0 : i32
    %c0_i32_1 = arith.constant 0 : i32
    return %c0_i32, %c0_i32_0 : i32, i32
  }
  func.func @transform_5(%arg0: i32) -> (i32, i32, i32, i32) {
    %c0_i32 = arith.constant 0 : i32
    %c0_i32_0 = arith.constant 0 : i32
    %c0_i32_1 = arith.constant 0 : i32
    %c0_i32_2 = arith.constant 0 : i32
    %c0_i32_3 = arith.constant 0 : i32
    return %c0_i32, %c0_i32_0, %c0_i32_1, %c0_i32_2 : i32, i32, i32, i32
  }
  func.func @transform_6(%arg0: i32) -> (i32, i32) {
    %c0_i32 = arith.constant 0 : i32
    %c0_i32_0 = arith.constant 0 : i32
    %c0_i32_1 = arith.constant 0 : i32
    return %c0_i32, %c0_i32_0 : i32, i32
  }
  func.func @transform_7(%arg0: i32) -> (i32, i32, i32) {
    %c0_i32 = arith.constant 0 : i32
    %c0_i32_0 = arith.constant 0 : i32
    %c0_i32_1 = arith.constant 0 : i32
    return %arg0, %c0_i32, %c0_i32_0 : i32, i32, i32
  }
}

</mosaic_0001>

<bundles_post_ra>
// kernel: tpu_custom_call.1
= control target key start
LH: loop header
LB: loop body
LE: loop exit
PB: predicated region body
PF: predicated region fallthrough
CT: control target
= control target key end

     0   :  { %12 = vsyncpa [#allocation3], 0  ;;  %s2812_s0 = inlined_call_operand.vmem [shape: f32[2,4,256], index: 0, kind: input, shape index: {}]   ;;  %s2813_s1 = inlined_call_operand.vmem [shape: f32[2,4,256], index: 1, kind: input, shape index: {}]   ;;  %s2814_s2 = inlined_call_operand.vmem [shape: f32[3,3,8,4], index: 2, kind: input, shape index: {}]   ;;  %s2815_s3 = inlined_call_operand.vmem [shape: f32[3,3,8,4], index: 3, kind: input, shape index: {}]   ;;  %s2816_s4 = inlined_call_operand.vmem [shape: f32[8,1], index: 4, kind: input, shape index: {}]   ;;  %s2817_s5 = inlined_call_operand.vmem [shape: f32[3,3,8,8], index: 5, kind: input, shape index: {}]   ;;  %s2818_s6 = inlined_call_operand.vmem [shape: f32[8,1], index: 6, kind: input, shape index: {}]   ;;  %s2819_s7 = inlined_call_operand.hbm [shape: f32[2,8,256], index: 7, kind: output, shape index: {}]  }
   0x1   :  { %14 = vsyncpa [#allocation3 + $0x1], 0  ;;  %s2339_s24 = smov 0   ;;  %s2341_s25 = smov 0  }
   0x2   :  { %s2343_s26 = smov 0   ;;  %s2345_s27 = smov 0  }
   0x3 LB: > { %s2360_s28 = sadd.s32 4294967295, %s2292_s27   ;;  %s2035_s29 = sadd.s32 4294967294, %s2292_s27   ;;  %s2292_s27 = sphi %s2345_s27, %s2835_s27   ;;  %s2288_s26 = sphi %s2343_s26, %s2834_s26   ;;  %s2284_s25 = sphi %s2341_s25, %s2833_s25   ;;  %s2280_s24 = sphi %s2339_s24, %s2832_s24  }
   0x4   : > { %s2364_s30 = sadd.s32 1, %s2292_s27   ;;  %s184_s8 = sadd.s32 1, %s2288_s26 }
   0x5   : > { %s181_s9 = ssub.s32 %s2292_s27, %s2364_s30  ;;  %p194_p0 = scmp.ne.s32.totalorder %s2288_s26, %s2284_s25 }
   0x6   : > { %p182_p1 = scmp.eq.s32.totalorder %s181_s9, 0  ;;  %p195_p2 = scmp.eq.s32.totalorder %s2360_s28, 1 }
   0x7   : > { %p200_p3 = scmp.ne.s32.totalorder %s2284_s25, %s2280_s24  ;;  %p201_p4 = scmp.eq.s32.totalorder %s2035_s29, 1 }
   0x8   : > { %s2375_s10 = scalar_select %p182_p1, %s2288_s26, %s184_s8  }
   0x9   : > { %p2377_p5 = por %p195_p2, %p194_p0  ;;  %p2381_p6 = por %p201_p4, %p200_p3 }
   0xa   : > { %p2038_p7 = scmp.ge.s32.totalorder %s2292_s27, 1  ;;  %p250_p8 = scmp.lt.s32.totalorder %s2292_s27, 3 }
   0xc   : > { %p251_p9 = pnand %p2038_p7, %p250_p8 }
   0xd   : > { %p287_p10 = scmp.lt.s32.totalorder (!%p251_p9), %s2360_s28, 1  ;;  %s2294_s18 = smov (!%p251_p9), 1  }
   0xe   : > { %254 = sbr.rel (%p251_p9) target bundleno = 957 (0x3bd), region = 48  ;;  %s2295_s19 = smov (!%p251_p9), 127  }
   0xf   : > { %s2296_s20 = smov (!%p251_p9), 16   ;;  %s2297_s29 = smov (!%p251_p9), 112  }
  0x10   : > { %s284_s8 = sand.u32 (!%p251_p9), 1, %s2284_s25  }
  0x11   : > { %s2039_s9 = sshll.u32 (!%p251_p9), %s284_s8, 4 }
  0x13   : > { %s288_s13 = scalar_select %p287_p10, %s2360_s28, 1  ;;  %v297_v14 = vlaneseq  ;;  %vm335_vm0 = vcmask 7168   ;;  %vm383_vm2 = vcmask 1043456   ;;  %vm355_vm4 = vcmask 1039360   ;;  %v2044_v49 = vld [vmem:[%s2814_s2 + $0x18] sm:$0xff]  ;;  %v2053_v52 = vld [vmem:[%s2814_s2 + $0x30] sm:$0xff] }
  0x14   : > { %vm379_vm7 = vcmask 31744   ;;  %vm480_vm8 = vcmask 916480   ;;  %v2063_v54 = vld [vmem:[%s2814_s2 + $0x20] sm:$0xff]  ;;  %vm372_vm9 = vcmask 130048   ;;  %v2058_v60 = vld [vmem:[%s2814_s2 + $0x8] sm:$0xff]  ;;  %vm1477_vm12 = vcmask 64512  }
  0x15   : > { %s2180_s14 = sshll.u32 %s288_s13, 3  ;;  %v298_v17 = vand.u32 127, %v297_v14  ;;  %v376_v56 = vld [vmem:[%s2814_s2] sm:$0xff]  ;;  %vm2713_vm13 = vmneg %vm372_vm9  ;;  %s2182_s13 = sshll.u32 %s2360_s28, 4 }
  0x16   : > { %s291_s17 = scalar_lea.vmem %s2812_s0, %s2180_s14  ;;  %s296_s23 = scalar_lea.vmem %s2813_s1, %s2180_s14  ;;  %v2152_v34 = vld [vmem:[%s2817_s5 + $0x20] sm:$0xff] }
  0x17   : > { %v324_v0 = vld [vmem:[%s291_s17] sm:$0xff]  ;;  %v304_v18 = vand.u32 15, %v298_v17  ;;  %v299_v20 = vadd.s32 128, %v298_v17  ;;  %s1959_s16 = scalar_lea.hbm %s2819_s7, %s2182_s13  ;;  %s286_s17 = scalar_lea.vmem [#allocation2], %s2039_s9 }
  0x18   : > { %328 = vst [vmem:[#allocation1] ss:$2 sm:$0xff] %v324_v0  ;;  %v2404_v9 = vld [vmem:[%s296_s23] sm:$0xff]  ;;  %s1961_s21 = sshll.u32 %s286_s17, 4  ;;  %s1948_s28 = scalar_lea.sflag [#allocation3], %s284_s8  ;;  %s1962_s21 = int_to_ptr.vmem [resolvable:$true] %s1961_s21 }
  0x19   : > { %vm2412_vm1 = vcmp.eq.s32.totalorder %v304_v18, 0  ;;  %v311_v24 = vand.u32 15, %v299_v20  ;;  %vm2455_vm6 = vcmp.eq.s32.totalorder %v304_v18, 15  ;;  %s2250_s23 = scalar_lea.hbm %s2819_s7, 32 }
  0x1a   : > { %vm2133_vm10 = vmneg %vm2412_vm1 }
  0x1b   : > { %vm2421_vm3 = vcmp.eq.s32.totalorder %v311_v24, 0  ;;  %vm2437_vm5 = vcmp.eq.s32.totalorder %v311_v24, 15  ;;  %vm2165_vm15 = vmneg %vm2455_vm6 }
  0x1c   : > { %vm2136_vm11 = vmneg %vm2421_vm3 }
  0x1d   : > { %vm2168_vm14 = vmneg %vm2437_vm5 }
  0x1f   : > { %v329_v1 = vld.sshfl [vmem:[#allocation1] sm:$0xff pattern:$0x75316420]  ;;  %v330_v2 = vld.sshfl [vmem:[#allocation1 + $0x8] sm:$0xff pattern:$0x75316420] }
  0x20   : > { %331 = vrot.lane.b32.xlu0 %v329_v1, %s2294_s18  ;;  %348 = vst [vmem:[#allocation1] ss:$2 sm:$0xff] %v324_v0 }
  0x27   : > { %v349_v3 = vld.sshfl [vmem:[#allocation1] sm:$0xff pattern:$0x75316420]  ;;  %v350_v4 = vld.sshfl [vmem:[#allocation1 + $0x8] sm:$0xff pattern:$0x75316420] }
  0x28   : > { %333 = vrot.lane.b32.xlu0 %v330_v2, %s2294_s18  ;;  %351 = vrot.lane.b32.xlu1 %v349_v3, %s2295_s19  ;;  %536 = vst [vmem:[#allocation1] ss:$2 sm:$0xff] %v324_v0 }
  0x2f   : > { %v537_v5 = vld.sshfl [vmem:[#allocation1] sm:$0xff pattern:$0x75316420]  ;;  %v538_v6 = vld.sshfl [vmem:[#allocation1 + $0x8] sm:$0xff pattern:$0x75316420] }
  0x30   : > { %353 = vrot.lane.b32.xlu1 %v350_v4, %s2295_s19  ;;  %600 = vst [vmem:[#allocation1] ss:$2 sm:$0xff] %v324_v0  ;;  %541 = vrot.lane.b32.xlu0 %v538_v6, %s2296_s20 }
  0x37   : > { %v2397_v7 = vld.sshfl [vmem:[#allocation1] sm:$0xff pattern:$0x75316420]  ;;  %v2399_v8 = vld.sshfl [vmem:[#allocation1 + $0x8] sm:$0xff pattern:$0x75316420] }
  0x38   : > { %652 = vst [vmem:[#allocation1] ss:$2 sm:$0xff] %v324_v0 }
  0x3f   : > { %v653_v10 = vld.sshfl [vmem:[#allocation1] sm:$0xff pattern:$0x75316420]  ;;  %v654_v11 = vld.sshfl [vmem:[#allocation1 + $0x8] sm:$0xff pattern:$0x75316420] }
  0x40   : > { %887 = vst [vmem:[#allocation1] ss:$2 sm:$0xff] %v2404_v9 }
  0x47   : > { %v888_v12 = vld.sshfl [vmem:[#allocation1] sm:$0xff pattern:$0x75316420]  ;;  %v889_v13 = vld.sshfl [vmem:[#allocation1 + $0x8] sm:$0xff pattern:$0x75316420] }
  0x48   : > { %890 = vrot.lane.b32.xlu2 %v888_v12, %s2294_s18  ;;  %900 = vst [vmem:[#allocation1] ss:$2 sm:$0xff] %v2404_v9 }
  0x4f   : > { %v901_v15 = vld.sshfl [vmem:[#allocation1] sm:$0xff pattern:$0x75316420]  ;;  %v902_v16 = vld.sshfl [vmem:[#allocation1 + $0x8] sm:$0xff pattern:$0x75316420] }
  0x50   : > { %892 = vrot.lane.b32.xlu2 %v889_v13, %s2294_s18  ;;  %1083 = vst [vmem:[#allocation1] ss:$2 sm:$0xff] %v2404_v9 }
  0x57   : > { %v1084_v43 = vld.sshfl [vmem:[#allocation1] sm:$0xff pattern:$0x75316420]  ;;  %v1085_v44 = vld.sshfl [vmem:[#allocation1 + $0x8] sm:$0xff pattern:$0x75316420] }
  0x58   : > { %539 = vrot.lane.b32.xlu2 %v537_v5, %s2296_s20  ;;  %1147 = vst [vmem:[#allocation1] ss:$2 sm:$0xff] %v2404_v9 }
  0x5f   : > { %v2483_v45 = vld.sshfl [vmem:[#allocation1] sm:$0xff pattern:$0x75316420]  ;;  %v2485_v46 = vld.sshfl [vmem:[#allocation1 + $0x8] sm:$0xff pattern:$0x75316420] }
  0x60   : > { %1199 = vst [vmem:[#allocation1] ss:$2 sm:$0xff] %v2404_v9 }
  0x67   : > { %v1200_v48 = vld.sshfl [vmem:[#allocation1] sm:$0xff pattern:$0x75316420] }
  0x92   : > { %v332_v21 = vpop.permute.xlu0 %331 }
  0x93   : > { %v339_v22 = vsel %vm335_vm0, 0.0, %v332_v21 }
  0x94   : > { %v344_v23 = vsel %vm2412_vm1, 0.0, %v339_v22  ;;  %v1201_v22 = vld.sshfl [vmem:[#allocation1 + $0x8] sm:$0xff pattern:$0x75316420] }
  0x95   : > { %2045 = vmatpush.msk.msra.mxu0 %vm383_vm2, %v344_v23  ;;  %368 = vrot.lane.b32.xlu0 %v344_v23, %s2296_s20 }
  0x96   : > { %2046 = vmatmul.msk.f32.vlgmr.msra.gmra.mxu0 %vm379_vm7, %v2044_v49 }
  0x9a   : > { %v334_v26 = vpop.permute.xlu0 %333  ;;  %v352_v29 = vpop.permute.xlu1 %351 }
  0x9b   : > { %v336_v27 = vsel %vm335_vm0, %v332_v21, %v334_v26  ;;  %v2073_v26 = vld [vmem:[%s2814_s2 + $0x10] sm:$0xff] }
  0x9c   : > { %v345_v28 = vsel %vm2421_vm3, 0.0, %v336_v27  ;;  %v922_v27 = vld [vmem:[%s2815_s3] sm:$0xff] }
  0x9d   : > { %2047 = vmatpush.msk.msra.mxu1 %vm383_vm2, %v345_v28  ;;  %370 = vrot.lane.b32.xlu1 %v345_v28, %s2296_s20 }
  0x9e   : > { %478 = vrot.lane.b32.xlu2 %v345_v28, %s2297_s29  ;;  %903 = vrot.lane.b32.xlu0 %v901_v15, %s2295_s19 }
  0x9f   : > { %2048 = vmatmul.msk.f32.vlgmr.msra.gmra.mxu1 %vm379_vm7, %v2044_v49  ;;  %v2298_v49 = vmov 0  }
  0xa0   : > { %2227 = vset.pattern.permute.xlu2 %v2298_v49  ;;  %2228 = vset.pattern.permute.xlu1 %v2298_v49 }
  0xa1   : > { %2229 = vset.pattern.permute.xlu0 %v2298_v49 }
  0xa2   : > { %v891_v30 = vpop.permute.xlu2 %890  ;;  %v354_v31 = vpop.permute.xlu1 %353 }
  0xa3   : > { %v897_v32 = vsel %vm335_vm0, 0.0, %v891_v30  ;;  %v359_v33 = vsel %vm355_vm4, %v354_v31, 0.0  ;;  %v356_v37 = vsel %vm355_vm4, %v352_v29, %v354_v31  ;;  %v542_v53 = vpop.permute.xlu0 %541 }
  0xa4   : > { %v2443_v35 = vsel %vm2412_vm1, 0.0, %v897_v32  ;;  %v2448_v36 = vsel %vm2437_vm5, 0.0, %v359_v33  ;;  %v2461_v39 = vsel %vm2455_vm6, 0.0, %v356_v37  ;;  %v2083_v32 = vld [vmem:[%s2814_s2 + $0x40] sm:$0xff]  ;;  %v2092_v37 = vld [vmem:[%s2815_s3 + $0x18] sm:$0xff] }
  0xa5   : > { %476 = vrot.lane.b32.xlu1 %v344_v23, %s2297_s29 }
  0xa6   : > { %657 = vrot.lane.b32.xlu0 %v654_v11, %s2297_s29  ;;  %655 = vrot.lane.b32.xlu2 %v653_v10, %s2297_s29 }
  0xaa   : > { %v893_v40 = vpop.permute.xlu2 %892 }
  0xab   : > { %v894_v41 = vsel %vm335_vm0, %v891_v30, %v893_v40 }
  0xac   : > { %v2472_v42 = vsel %vm2421_vm3, 0.0, %v894_v41  ;;  %v2102_v41 = vld [vmem:[%s2815_s3 + $0x8] sm:$0xff] }
  0xad   : > { %905 = vrot.lane.b32.xlu1 %v902_v16, %s2295_s19 }
  0xae   : > { %915 = vrot.lane.b32.xlu0 %v2443_v35, %s2296_s20  ;;  %718 = vrot.lane.b32.xlu2 %v2448_v36, %s2296_s20 }
  0xb2   : > { %v540_v47 = vpop.permute.xlu2 %539 }
  0xb3   : > { %v545_v58 = vsel %vm372_vm9, 0.0, %v540_v47  ;;  %v543_v0 = vsel %vm372_vm9, %v540_v47, %v542_v53 }
  0xb5   : > { %716 = vrot.lane.b32.xlu1 %v2461_v39, %s2296_s20 }
  0xb6   : > { %828 = vrot.lane.b32.xlu0 %v2448_v36, %s2297_s29  ;;  %826 = vrot.lane.b32.xlu2 %v2461_v39, %s2297_s29 }
  0xbd   : > { %917 = vrot.lane.b32.xlu1 %v2472_v42, %s2296_s20 }
  0xbe   : > { %1026 = vrot.lane.b32.xlu2 %v2472_v42, %s2297_s29  ;;  %1086 = vrot.lane.b32.xlu0 %v1084_v43, %s2296_s20 }
  0xc5   : > { %1024 = vrot.lane.b32.xlu1 %v2443_v35, %s2297_s29 }
  0xcd   : > { %1088 = vrot.lane.b32.xlu1 %v1085_v44, %s2296_s20 }
  0xd5   : > { %1202 = vrot.lane.b32.xlu1 %v1200_v48, %s2297_s29  ;;  %v1432_v48 = vld [vmem:[%s2816_s4] sm:$0xff] }
  0xf8   : > { %v479_v50 = vpop.permute.xlu2 %478 }
  0xf9   : > { %v483_v51 = vsel %vm480_vm8, %v479_v50, 0.0 }
  0xfa   : > { %2056 = vmatpush.msk.msrb.mxu1 %vm383_vm2, %v483_v51 }
  0xfb   : > { %2057 = vmatmul.msk.f32.vlgmr.msrb.gmra.mxu1 %vm379_vm7, %v2053_v52 }
  0xfc   : > { %2066 = vmatpush.msk.msra.mxu1 %vm383_vm2, %v2399_v8  ;;  %v2068_v8 = vld [vmem:[%s2814_s2 + $0x38] sm:$0xff] }
 0x100   : > { %v656_v63 = vpop.permute.xlu2 %655 }
 0x103   : > { %2067 = vmatmul.msk.f32.vlgmr.msra.gmra.mxu1 %vm379_vm7, %v2063_v54 }
 0x107   : > { %v369_v55 = vpop.permute.xlu0 %368 }
 0x108   : > { %v375_v57 = vsel %vm372_vm9, 0.0, %v369_v55  ;;  %v719_v6 = vpop.permute.xlu2 %718 }
 0x109   : > { %2049 = vmatpush.msk.msra.mxu2 %vm383_vm2, %v375_v57 }
 0x10a   : > { %2050 = vmatmul.msk.f32.vlgmr.msra.gmra.mxu2 %vm379_vm7, %v376_v56 }
 0x10b   : > { %2059 = vmatpush.msk.msrb.mxu2 %vm383_vm2, %v545_v58 }
 0x10f   : > { %v371_v59 = vpop.permute.xlu1 %370 }
 0x110   : > { %v904_v61 = vpop.permute.xlu0 %903  ;;  %v373_v62 = vsel %vm372_vm9, %v369_v55, %v371_v59  ;;  %v827_v16 = vpop.permute.xlu2 %826  ;;  %v2122_v55 = vld [vmem:[%s2815_s3 + $0x28] sm:$0xff] }
 0x111   : > { %2051 = vmatpush.msk.msra.mxu3 %vm383_vm2, %v373_v62 }
 0x112   : > { %2052 = vmatmul.msk.f32.vlgmr.msra.gmra.mxu3 %vm379_vm7, %v376_v56  ;;  %2060 = vmatmul.msk.f32.vlgmr.msrb.gmra.mxu2 %vm379_vm7, %v2058_v60 }
 0x113   : > { %2061 = vmatpush.msk.msrb.mxu3 %vm383_vm2, %v543_v0  ;;  %v405_v0 = vpop.f32.mrf.mxu0 }
 0x117   : > { %v477_v1 = vpop.permute.xlu1 %476 }
 0x118   : > { %v658_v2 = vpop.permute.xlu0 %657  ;;  %v481_v3 = vsel %vm480_vm8, %v477_v1, %v479_v50  ;;  %v1027_v28 = vpop.permute.xlu2 %1026 }
 0x119   : > { %v659_v4 = vsel %vm480_vm8, %v656_v63, %v658_v2  ;;  %v661_v5 = vsel %vm480_vm8, %v658_v2, 0.0  ;;  %2054 = vmatpush.msk.msrb.mxu0 %vm383_vm2, %v481_v3  ;;  %v1030_v30 = vsel %vm480_vm8, %v1027_v28, 0.0 }
 0x11a   : > { %2069 = vmatpush.msk.msra.mxu2 %vm383_vm2, %v659_v4  ;;  %2071 = vmatpush.msk.msra.mxu3 %vm383_vm2, %v661_v5 }
 0x11b   : > { %2062 = vmatmul.msk.f32.vlgmr.msrb.gmra.mxu3 %vm379_vm7, %v2058_v60  ;;  %2055 = vmatmul.msk.f32.vlgmr.msrb.gmra.mxu0 %vm379_vm7, %v2053_v52  ;;  %v2112_v52 = vld [vmem:[%s2815_s3 + $0x38] sm:$0xff]  ;;  %v2127_v60 = vld [vmem:[%s2815_s3 + $0x40] sm:$0xff] }
 0x11c   : > { %2079 = vmatpush.msk.msrb.mxu2 %vm383_vm2, %v2461_v39  ;;  %2081 = vmatpush.msk.msrb.mxu3 %vm383_vm2, %v2448_v36  ;;  %v2107_v39 = vld [vmem:[%s2815_s3 + $0x20] sm:$0xff]  ;;  %v425_v63 = vpop.f32.mrf.mxu1 }
 0x11d   : > { %2064 = vmatpush.msk.msra.mxu0 %vm383_vm2, %v2397_v7  ;;  %2070 = vmatmul.msk.f32.vlgmr.msra.gmra.mxu2 %vm379_vm7, %v2068_v8  ;;  %v2078_v7 = vld [vmem:[%s2814_s2 + $0x28] sm:$0xff] }
 0x11f   : > { %v906_v9 = vpop.permute.xlu1 %905 }
 0x120   : > { %v907_v10 = vsel %vm355_vm4, %v904_v61, %v906_v9  ;;  %v910_v11 = vsel %vm355_vm4, %v906_v9, 0.0  ;;  %v916_v12 = vpop.permute.xlu0 %915 }
 0x121   : > { %v921_v13 = vsel %vm372_vm9, 0.0, %v916_v12  ;;  %v2546_v14 = vsel %vm2455_vm6, 0.0, %v907_v10  ;;  %v2550_v15 = vsel %vm2437_vm5, 0.0, %v910_v11 }
 0x122   : > { %1263 = vrot.lane.b32.xlu2 %v2546_v14, %s2296_s20  ;;  %1265 = vrot.lane.b32.xlu0 %v2550_v15, %s2296_s20 }
 0x123   : > { %1375 = vrot.lane.b32.xlu1 %v2550_v15, %s2297_s29  ;;  %2072 = vmatmul.msk.f32.vlgmr.msra.gmra.mxu3 %vm379_vm7, %v2068_v8 }
 0x124   : > { %2065 = vmatmul.msk.f32.vlgmr.msra.gmra.mxu0 %vm379_vm7, %v2063_v54  ;;  %2088 = vmatpush.msk.msra.mxu2 %vm383_vm2, %v921_v13 }
 0x125   : > { %2080 = vmatmul.msk.f32.vlgmr.msrb.gmra.mxu2 %vm379_vm7, %v2078_v7 }
 0x127   : > { %v717_v17 = vpop.permute.xlu1 %716 }
 0x128   : > { %v720_v18 = vsel %vm372_vm9, %v717_v17, %v719_v6  ;;  %v722_v20 = vsel %vm372_vm9, 0.0, %v717_v17  ;;  %v829_v21 = vpop.permute.xlu0 %828 }
 0x129   : > { %v830_v23 = vsel %vm480_vm8, %v827_v16, %v829_v21  ;;  %v832_v24 = vsel %vm480_vm8, %v829_v21, 0.0  ;;  %2074 = vmatpush.msk.msrb.mxu0 %vm383_vm2, %v722_v20  ;;  %2076 = vmatpush.msk.msrb.mxu1 %vm383_vm2, %v720_v18 }
 0x12a   : > { %1373 = vrot.lane.b32.xlu0 %v2546_v14, %s2297_s29  ;;  %1204 = vrot.lane.b32.xlu2 %v1201_v22, %s2297_s29 }
 0x12b   : > { %2084 = vmatpush.msk.msra.mxu0 %vm383_vm2, %v830_v23  ;;  %2086 = vmatpush.msk.msra.mxu1 %vm383_vm2, %v832_v24 }
 0x12c   : > { %2075 = vmatmul.msk.f32.vlgmr.msrb.gmra.mxu0 %vm379_vm7, %v2073_v26  ;;  %2077 = vmatmul.msk.f32.vlgmr.msrb.gmra.mxu1 %vm379_vm7, %v2073_v26 }
 0x12d   : > { %2093 = vmatpush.msk.msrb.mxu0 %vm383_vm2, %v2443_v35  ;;  %2095 = vmatpush.msk.msrb.mxu1 %vm383_vm2, %v2472_v42  ;;  %v2097_v35 = vld [vmem:[%s2815_s3 + $0x30] sm:$0xff] }
 0x12e   : > { %2082 = vmatmul.msk.f32.vlgmr.msrb.gmra.mxu3 %vm379_vm7, %v2078_v7  ;;  %2089 = vmatmul.msk.f32.vlgmr.msra.gmra.mxu2 %vm379_vm7, %v922_v27 }
 0x12f   : > { %v918_v29 = vpop.permute.xlu1 %917 }
 0x130   : > { %v919_v31 = vsel %vm372_vm9, %v916_v12, %v918_v29  ;;  %v1087_v40 = vpop.permute.xlu0 %1086 }
 0x131   : > { %2090 = vmatpush.msk.msra.mxu3 %vm383_vm2, %v919_v31  ;;  %v1092_v42 = vsel %vm372_vm9, 0.0, %v1087_v40 }
 0x132   : > { %1435 = vperm.xlu2 %2227, %v1432_v48  }
 0x133   : > { %2100 = vmatpush.msk.msrb.mxu3 %vm383_vm2, %v1030_v30 }
 0x134   : > { %2085 = vmatmul.msk.f32.vlgmr.msra.gmra.mxu0 %vm379_vm7, %v2083_v32  ;;  %2087 = vmatmul.msk.f32.vlgmr.msra.gmra.mxu1 %vm379_vm7, %v2083_v32 }
 0x135   : > { %2103 = vmatpush.msk.msra.mxu0 %vm383_vm2, %v1092_v42 }
 0x136   : > { %2091 = vmatmul.msk.f32.vlgmr.msra.gmra.mxu3 %vm379_vm7, %v922_v27 }
 0x137   : > { %v1025_v33 = vpop.permute.xlu1 %1024  ;;  %2110 = vmatpush.msk.msra.mxu3 %vm383_vm2, %v2485_v46  ;;  %v2117_v46 = vld [vmem:[%s2815_s3 + $0x10] sm:$0xff] }
 0x138   : > { %v1028_v36 = vsel %vm480_vm8, %v1025_v33, %v1027_v28 }
 0x139   : > { %2098 = vmatpush.msk.msrb.mxu2 %vm383_vm2, %v1028_v36 }
 0x13a   : > { %2099 = vmatmul.msk.f32.vlgmr.msrb.gmra.mxu2 %vm379_vm7, %v2097_v35 }
 0x13b   : > { %2108 = vmatpush.msk.msra.mxu2 %vm383_vm2, %v2483_v45 }
 0x13c   : > { %2094 = vmatmul.msk.f32.vlgmr.msrb.gmra.mxu0 %vm379_vm7, %v2092_v37  ;;  %2096 = vmatmul.msk.f32.vlgmr.msrb.gmra.mxu1 %vm379_vm7, %v2092_v37 }
 0x13e   : > { %2101 = vmatmul.msk.f32.vlgmr.msrb.gmra.mxu3 %vm379_vm7, %v2097_v35 }
 0x13f   : > { %v1089_v43 = vpop.permute.xlu1 %1088 }
 0x140   : > { %v1090_v44 = vsel %vm372_vm9, %v1087_v40, %v1089_v43 }
 0x141   : > { %2105 = vmatpush.msk.msra.mxu1 %vm383_vm2, %v1090_v44 }
 0x142   : > { %2109 = vmatmul.msk.f32.vlgmr.msra.gmra.mxu2 %vm379_vm7, %v2107_v39 }
 0x144   : > { %2104 = vmatmul.msk.f32.vlgmr.msra.gmra.mxu0 %vm379_vm7, %v2102_v41  ;;  %2106 = vmatmul.msk.f32.vlgmr.msra.gmra.mxu1 %vm379_vm7, %v2102_v41 }
 0x146   : > { %2111 = vmatmul.msk.f32.vlgmr.msra.gmra.mxu3 %vm379_vm7, %v2107_v39 }
 0x147   : > { %v1203_v50 = vpop.permute.xlu1 %1202 }
 0x178   : > { %v531_v3 = vpop.f32.mrf.mxu1 }
 0x17c   : > { %v1264_v45 = vpop.permute.xlu2 %1263 }
 0x17d   : > { %v1269_v47 = vsel %vm372_vm9, 0.0, %v1264_v45 }
 0x17e   : > { %2118 = vmatpush.msk.msrb.mxu2 %vm383_vm2, %v1269_v47 }
 0x17f   : > { %2119 = vmatmul.msk.f32.vlgmr.msrb.gmra.mxu2 %vm379_vm7, %v2117_v46 }
 0x180   : > { %v647_v8 = vpop.f32.mrf.mxu1 }
 0x184   : > { %v1205_v51 = vpop.permute.xlu2 %1204 }
 0x185   : > { %v1208_v53 = vsel %vm480_vm8, %v1205_v51, 0.0  ;;  %v1206_v54 = vsel %vm480_vm8, %v1203_v50, %v1205_v51 }
 0x186   : > { %2113 = vmatpush.msk.msrb.mxu0 %vm383_vm2, %v1206_v54  ;;  %2115 = vmatpush.msk.msrb.mxu1 %vm383_vm2, %v1208_v53 }
 0x187   : > { %2114 = vmatmul.msk.f32.vlgmr.msrb.gmra.mxu0 %vm379_vm7, %v2112_v52  ;;  %2116 = vmatmul.msk.f32.vlgmr.msrb.gmra.mxu1 %vm379_vm7, %v2112_v52 }
 0x188   : > { %2123 = vmatpush.msk.msra.mxu0 %vm383_vm2, %v2546_v14  ;;  %2125 = vmatpush.msk.msra.mxu1 %vm383_vm2, %v2550_v15 }
 0x18d   : > { %v453_v2 = vpop.f32.mrf.mxu2 }
 0x18e   : > { %v454_v11 = vadd.f32 %v453_v2, %v405_v0 }
 0x18f   : > { %2124 = vmatmul.msk.f32.vlgmr.msra.gmra.mxu0 %vm379_vm7, %v2122_v55  ;;  %2126 = vmatmul.msk.f32.vlgmr.msra.gmra.mxu1 %vm379_vm7, %v2122_v55 }
 0x194   : > { %v1266_v56 = vpop.permute.xlu0 %1265 }
 0x195   : > { %v1267_v57 = vsel %vm372_vm9, %v1264_v45, %v1266_v56  ;;  %v1376_v58 = vpop.permute.xlu1 %1375  ;;  %v473_v1 = vpop.f32.mrf.mxu3 }
 0x196   : > { %v1379_v59 = vsel %vm480_vm8, %v1376_v58, 0.0  ;;  %2120 = vmatpush.msk.msrb.mxu3 %vm383_vm2, %v1267_v57  ;;  %v573_v6 = vpop.f32.mrf.mxu2  ;;  %v474_v10 = vadd.f32 %v473_v1, %v425_v63 }
 0x197   : > { %2121 = vmatmul.msk.f32.vlgmr.msrb.gmra.mxu3 %vm379_vm7, %v2117_v46 }
 0x198   : > { %2130 = vmatpush.msk.msra.mxu3 %vm383_vm2, %v1379_v59  ;;  %v511_v4 = vpop.f32.mrf.mxu0  ;;  %v535_v14 = vadd.f32 %v531_v3, %v474_v10 }
 0x199   : > { %v534_v15 = vadd.f32 %v511_v4, %v454_v11 }
 0x19b   : > { %v596_v18 = vadd.f32 %v573_v6, %v534_v15  ;;  %v1436_v6 = vpop.permute.xlu2 %1435 }
 0x19c   : > { %v1374_v61 = vpop.permute.xlu0 %1373 }
 0x19d   : > { %v1377_v62 = vsel %vm480_vm8, %v1374_v61, %v1376_v58 }
 0x19e   : > { %2128 = vmatpush.msk.msra.mxu2 %vm383_vm2, %v1377_v62  ;;  %v593_v5 = vpop.f32.mrf.mxu3 }
 0x19f   : > { %2131 = vmatmul.msk.f32.vlgmr.msra.gmra.mxu3 %vm379_vm7, %v2127_v60  ;;  %2129 = vmatmul.msk.f32.vlgmr.msra.gmra.mxu2 %vm379_vm7, %v2127_v60  ;;  %v597_v17 = vadd.f32 %v593_v5, %v535_v14 }
 0x1a0   : > { %v689_v13 = vpop.f32.mrf.mxu2 }
 0x1a1   : > { %v627_v9 = vpop.f32.mrf.mxu0  ;;  %v651_v21 = vadd.f32 %v647_v8, %v597_v17 }
 0x1a2   : > { %v650_v23 = vadd.f32 %v627_v9, %v596_v18 }
 0x1a4   : > { %v712_v28 = vadd.f32 %v689_v13, %v650_v23 }
 0x1a6   : > { %v709_v12 = vpop.f32.mrf.mxu3 }
 0x1a7   : > { %v713_v26 = vadd.f32 %v709_v12, %v651_v21 }
 0x1a8   : > { %v801_v22 = vpop.f32.mrf.mxu2 }
 0x1a9   : > { %v770_v7 = vpop.f32.mrf.mxu1  ;;  %v750_v16 = vpop.f32.mrf.mxu0 }
 0x1aa   : > { %v774_v29 = vadd.f32 %v770_v7, %v713_v26  ;;  %v773_v30 = vadd.f32 %v750_v16, %v712_v28  ;;  %v2132_v26 = vld [vmem:[%s2817_s5 + $0x18] sm:$0xff] }
 0x1ac   : > { %v824_v35 = vadd.f32 %v801_v22, %v773_v30 }
 0x1b1   : > { %v821_v20 = vpop.f32.mrf.mxu3  ;;  %v880_v24 = vpop.f32.mrf.mxu1 }
 0x1b2   : > { %v860_v27 = vpop.f32.mrf.mxu0  ;;  %v948_v32 = vpop.f32.mrf.mxu2  ;;  %v825_v33 = vadd.f32 %v821_v20, %v774_v29  ;;  %v1474_v29 = vld [vmem:[%s2817_s5] sm:$0xff] }
 0x1b3   : > { %v883_v40 = vadd.f32 %v860_v27, %v824_v35  ;;  %v1935_v35 = vld [vmem:[%s2818_s6] sm:$0xff] }
 0x1b4   : > { %v884_v39 = vadd.f32 %v880_v24, %v825_v33 }
 0x1b5   : > { %v971_v44 = vadd.f32 %v948_v32, %v883_v40 }
 0x1b9   : > { %v968_v31 = vpop.f32.mrf.mxu3  ;;  %v1019_v36 = vpop.f32.mrf.mxu1 }
 0x1ba   : > { %v999_v37 = vpop.f32.mrf.mxu0  ;;  %v972_v42 = vadd.f32 %v968_v31, %v884_v39 }
 0x1bb   : > { %v1022_v48 = vadd.f32 %v999_v37, %v971_v44 }
 0x1bc   : > { %v1023_v46 = vadd.f32 %v1019_v36, %v972_v42  ;;  %v2147_v36 = vld [vmem:[%s2817_s5 + $0x8] sm:$0xff]  ;;  %v2143_v42 = vld [vmem:[%s2817_s5 + $0x30] sm:$0xff] }
 0x1bd   : > { %v1058_v43 = vpop.f32.mrf.mxu2 }
 0x1be   : > { %v1081_v50 = vadd.f32 %v1058_v43, %v1022_v48 }
 0x1c1   : > { %v1078_v41 = vpop.f32.mrf.mxu3  ;;  %v1140_v45 = vpop.f32.mrf.mxu1 }
 0x1c2   : > { %v1120_v47 = vpop.f32.mrf.mxu0  ;;  %v1082_v49 = vadd.f32 %v1078_v41, %v1023_v46  ;;  %v2155_v46 = vld [vmem:[%s2817_s5 + $0x38] sm:$0xff] }
 0x1c3   : > { %v1143_v55 = vadd.f32 %v1120_v47, %v1081_v50 }
 0x1c4   : > { %v1144_v53 = vadd.f32 %v1140_v45, %v1082_v49 }
 0x1c5   : > { %v1174_v52 = vpop.f32.mrf.mxu2 }
 0x1c6   : > { %v1197_v58 = vadd.f32 %v1174_v52, %v1143_v55 }
 0x1c9   : > { %v1194_v51 = vpop.f32.mrf.mxu3 }
 0x1ca   : > { %v1198_v57 = vadd.f32 %v1194_v51, %v1144_v53  ;;  %v2164_v51 = vld [vmem:[%s2817_s5 + $0x28] sm:$0xff]  ;;  %v2159_v53 = vld [vmem:[%s2817_s5 + $0x10] sm:$0xff] }
 0x202   : > { %v1297_v61 = vpop.f32.mrf.mxu2 }
 0x204   : > { %v1236_v54 = vpop.f32.mrf.mxu0  ;;  %v1256_v56 = vpop.f32.mrf.mxu1 }
 0x205   : > { %v1260_v60 = vadd.f32 %v1256_v56, %v1198_v57  ;;  %v1259_v62 = vadd.f32 %v1236_v54, %v1197_v58  ;;  %v2171_v54 = vld [vmem:[%s2817_s5 + $0x40] sm:$0xff] }
 0x207   : > { %v1320_v2 = vadd.f32 %v1297_v61, %v1259_v62 }
 0x20c   : > { %v1368_v0 = vpop.f32.mrf.mxu1  ;;  %v1348_v1 = vpop.f32.mrf.mxu0 }
 0x20d   : > { %v1371_v4 = vadd.f32 %v1348_v1, %v1320_v2 }
 0x21a   : > { %v1317_v59 = vpop.f32.mrf.mxu3 }
 0x21b   : > { %v1321_v63 = vadd.f32 %v1317_v59, %v1260_v60 }
 0x21d   : > { %v1372_v3 = vadd.f32 %v1368_v0, %v1321_v63 }
 0x222   : > { %v1427_v5 = vpop.f32.mrf.mxu3  ;;  %v1407_v8 = vpop.f32.mrf.mxu2 }
 0x223   : > { %v1431_v9 = vadd.f32 %v1427_v5, %v1372_v3  ;;  %v1430_v10 = vadd.f32 %v1407_v8, %v1371_v4 }
 0x225   : > { %v1439_v11 = vadd.f32 %v1436_v6, %v1431_v9  ;;  %v1438_v12 = vadd.f32 %v1436_v6, %v1430_v10 }
 0x227   : > { %v1441_v13 = vmax.f32 %v1439_v11, 0.0  ;;  %v2669_v14 = vmax.f32 %v1438_v12, 0.0 }
 0x229   : > { %1446 = vrot.lane.b32.xlu1 %v1441_v13, %s2294_s18  ;;  %1454 = vrot.lane.b32.xlu2 %v2669_v14, %s2295_s19 }
 0x22a   : > { %1444 = vrot.lane.b32.xlu0 %v2669_v14, %s2294_s18  ;;  %s1963_s18 = sshll.u32 %s1959_s16, 4  ;;  %s1964_s18 = int_to_ptr.hbm [resolvable:$true] %s1963_s18 }
 0x232   : > { %1456 = vrot.lane.b32.xlu0 %v1441_v13, %s2295_s19  ;;  %s2244_s19 = sshra.s32 %s1964_s18, 4  ;;  %s2245_s19 = int_to_ptr.hbm [resolvable:$true] %s2244_s19 }
 0x233   : > { %p2251_p0 = scmp.lt.s32.totalorder %s2245_s19, %s2819_s7 }
 0x283   : > { %v1455_v22 = vpop.permute.xlu2 %1454 }
 0x29b   : > { %v1447_v15 = vpop.permute.xlu1 %1446 }
 0x29c   : > { %v1445_v7 = vpop.permute.xlu0 %1444 }
 0x29d   : > { %v1448_v16 = vsel %vm335_vm0, %v1445_v7, %v1447_v15  ;;  %v1451_v17 = vsel %vm335_vm0, 0.0, %v1445_v7 }
 0x29e   : > { %2134 = vmatpush.msk.msrb.mxu0 %vm2133_vm10, %v1451_v17  ;;  %2137 = vmatpush.msk.msrb.mxu1 %vm2136_vm11, %v1448_v16  ;;  %v1452_v18 = vsel %vm2412_vm1, 0.0, %v1451_v17  ;;  %v1453_v20 = vsel %vm2421_vm3, 0.0, %v1448_v16 }
 0x29f   : > { %1564 = vrot.lane.b32.xlu0 %v1452_v18, %s2297_s29  ;;  %1466 = vrot.lane.b32.xlu1 %v1452_v18, %s2296_s20 }
 0x2a0   : > { %1468 = vrot.lane.b32.xlu2 %v1453_v20, %s2296_s20  ;;  %2135 = vmatmul.msk.f32.vlgmr.msrb.gmra.mxu0 %vm1477_vm12, %v2132_v26 }
 0x2a1   : > { %2138 = vmatmul.msk.f32.vlgmr.msrb.gmra.mxu1 %vm1477_vm12, %v2132_v26 }
 0x2a4   : > { %v1457_v21 = vpop.permute.xlu0 %1456 }
 0x2a5   : > { %v1458_v19 = vsel %vm355_vm4, %v1455_v22, %v1457_v21  ;;  %v1461_v23 = vsel %vm355_vm4, %v1457_v21, 0.0 }
 0x2a6   : > { %v1462_v25 = vsel %vm2455_vm6, 0.0, %v1458_v19  ;;  %v1463_v24 = vsel %vm2437_vm5, 0.0, %v1461_v23 }
 0x2a7   : > { %1621 = vrot.lane.b32.xlu0 %v1441_v13, %s2296_s20  ;;  %1566 = vrot.lane.b32.xlu1 %v1453_v20, %s2297_s29 }
 0x2a8   : > { %1619 = vrot.lane.b32.xlu2 %v2669_v14, %s2296_s20 }
 0x2af   : > { %1721 = vrot.lane.b32.xlu1 %v2669_v14, %s2297_s29  ;;  %1778 = vrot.lane.b32.xlu0 %v1462_v25, %s2296_s20 }
 0x2b0   : > { %1723 = vrot.lane.b32.xlu2 %v1441_v13, %s2297_s29 }
 0x2b7   : > { %1780 = vrot.lane.b32.xlu1 %v1463_v24, %s2296_s20  ;;  %1882 = vrot.lane.b32.xlu0 %v1463_v24, %s2297_s29  ;;  %s2246_s20 = scalar_lea.hbm %s2245_s19, 16 }
 0x2b8   : > { %1880 = vrot.lane.b32.xlu2 %v1462_v25, %s2297_s29  ;;  %p2247_p11 = scmp.ne.s32.totalorder %s2245_s19, %s2246_s20  ;;  %p2252_p1 = scmp.lt.s32.totalorder %s2250_s23, %s2246_s20 }
 0x2ba   : > { %p2248_p12 = pnand %p2247_p11, %p2377_p5  ;;  %p2253_p2 = por %p2252_p1, %p2251_p0 }
 0x2bc   : > { %p2249_p13 = pneg %p2248_p12 }
 0x2be   : > { %p2254_p3 = pnand %p2253_p2, %p2249_p13 }
 0x2bf   : > { %1938 = vperm.xlu1 %2228, %v1935_v35  }
 0x2fa   : > { %v1469_v27 = vpop.permute.xlu2 %1468 }
 0x302   : > { %v1620_v33 = vpop.permute.xlu2 %1619 }
 0x30a   : > { %v1724_v43 = vpop.permute.xlu2 %1723 }
 0x311   : > { %v1467_v30 = vpop.permute.xlu1 %1466  ;;  %v1565_v31 = vpop.permute.xlu0 %1564 }
 0x312   : > { %v1470_v32 = vsel %vm372_vm9, %v1467_v30, %v1469_v27  ;;  %2140 = vmatpush.msk.msrb.mxu2 %vm2713_vm13, %v1467_v30  ;;  %v1881_v48 = vpop.permute.xlu2 %1880 }
 0x313   : > { %2141 = vmatmul.msk.f32.vlgmr.msrb.gmra.mxu2 %vm1477_vm12, %v1474_v29  ;;  %1559 = vmatpush.msrb.mxu3 %v1470_v32 }
 0x314   : > { %2149 = vmatpush.msk.msra.mxu2 %vm2713_vm13, %v1620_v33  ;;  %2142 = vmatmul.msk.f32.vlgmr.msrb.gmra.mxu3 %vm1477_vm12, %v1474_v29 }
 0x319   : > { %v1567_v37 = vpop.permute.xlu1 %1566  ;;  %v1622_v39 = vpop.permute.xlu0 %1621 }
 0x31a   : > { %v1568_v40 = vsel %vm480_vm8, %v1565_v31, %v1567_v37  ;;  %v1623_v41 = vsel %vm372_vm9, %v1620_v33, %v1622_v39  ;;  %2145 = vmatpush.msk.msra.mxu1 %vm480_vm8, %v1567_v37 }
 0x31b   : > { %1592 = vmatpush.msra.mxu0 %v1568_v40  ;;  %2150 = vmatmul.msk.f32.vlgmr.msra.gmra.mxu2 %vm1477_vm12, %v2147_v36 }
 0x31c   : > { %1667 = vmatpush.msra.mxu3 %v1623_v41  ;;  %1714 = vmatpush.msrb.mxu1 %v1441_v13 }
 0x31d   : > { %2144 = vmatmul.msk.f32.vlgmr.msra.gmra.mxu0 %vm1477_vm12, %v2143_v42  ;;  %2146 = vmatmul.msk.f32.vlgmr.msra.gmra.mxu1 %vm1477_vm12, %v2143_v42  ;;  %v1498_v55 = vpop.f32.mrf.mxu0 }
 0x31e   : > { %2151 = vmatmul.msk.f32.vlgmr.msra.gmra.mxu3 %vm1477_vm12, %v2147_v36  ;;  %1694 = vmatpush.msrb.mxu0 %v2669_v14  ;;  %v1518_v56 = vpop.f32.mrf.mxu1 }
 0x31f   : > { %2157 = vmatpush.msk.msrb.mxu3 %vm480_vm8, %v1724_v43 }
 0x321   : > { %2169 = vmatpush.msk.msra.mxu3 %vm2168_vm14, %v1461_v23  ;;  %v1722_v44 = vpop.permute.xlu1 %1721  ;;  %v1779_v45 = vpop.permute.xlu0 %1778 }
 0x322   : > { %v1725_v47 = vsel %vm480_vm8, %v1722_v44, %v1724_v43  ;;  %2161 = vmatpush.msk.msra.mxu0 %vm2713_vm13, %v1779_v45 }
 0x323   : > { %1749 = vmatpush.msrb.mxu2 %v1725_v47 }
 0x324   : > { %2156 = vmatmul.msk.f32.vlgmr.msrb.gmra.mxu2 %vm1477_vm12, %v2155_v46 }
 0x325   : > { %2153 = vmatmul.msk.f32.vlgmr.msrb.gmra.mxu0 %vm1477_vm12, %v2152_v34  ;;  %2154 = vmatmul.msk.f32.vlgmr.msrb.gmra.mxu1 %vm1477_vm12, %v2152_v34 }
 0x326   : > { %2158 = vmatmul.msk.f32.vlgmr.msrb.gmra.mxu3 %vm1477_vm12, %v2155_v46  ;;  %2166 = vmatpush.msk.msra.mxu2 %vm2165_vm15, %v1458_v19 }
 0x329   : > { %v1781_v49 = vpop.permute.xlu1 %1780  ;;  %v1883_v50 = vpop.permute.xlu0 %1882 }
 0x32a   : > { %v1782_v52 = vsel %vm372_vm9, %v1779_v45, %v1781_v49  ;;  %v1884_v38 = vsel %vm480_vm8, %v1881_v48, %v1883_v50 }
 0x32b   : > { %1826 = vmatpush.msra.mxu1 %v1782_v52  ;;  %1908 = vmatpush.msrb.mxu0 %v1884_v38 }
 0x32c   : > { %2167 = vmatmul.msk.f32.vlgmr.msra.gmra.mxu2 %vm1477_vm12, %v2164_v51 }
 0x32d   : > { %2173 = vmatpush.msk.msrb.mxu1 %vm480_vm8, %v1883_v50  ;;  %2162 = vmatmul.msk.f32.vlgmr.msra.gmra.mxu0 %vm1477_vm12, %v2159_v53 }
 0x32e   : > { %2163 = vmatmul.msk.f32.vlgmr.msra.gmra.mxu1 %vm1477_vm12, %v2159_v53  ;;  %2170 = vmatmul.msk.f32.vlgmr.msra.gmra.mxu3 %vm1477_vm12, %v2164_v51 }
 0x331   : > { %v1939_v21 = vpop.permute.xlu1 %1938 }
 0x335   : > { %2172 = vmatmul.msk.f32.vlgmr.msrb.gmra.mxu0 %vm1477_vm12, %v2171_v54 }
 0x336   : > { %2174 = vmatmul.msk.f32.vlgmr.msrb.gmra.mxu1 %vm1477_vm12, %v2171_v54 }
 0x396   : > { %v1541_v57 = vpop.f32.mrf.mxu2 }
 0x397   : > { %v1561_v58 = vpop.f32.mrf.mxu3  ;;  %v1542_v61 = vadd.f32 %v1541_v57, %v1498_v55 }
 0x398   : > { %v1562_v63 = vadd.f32 %v1561_v58, %v1518_v56 }
 0x39a   : > { %v1594_v59 = vpop.f32.mrf.mxu0  ;;  %v1614_v60 = vpop.f32.mrf.mxu1 }
 0x39b   : > { %v1617_v1 = vadd.f32 %v1594_v59, %v1542_v61  ;;  %v1618_v4 = vadd.f32 %v1614_v60, %v1562_v63 }
 0x39e   : > { %v1649_v62 = vpop.f32.mrf.mxu2 }
 0x39f   : > { %v1672_v5 = vadd.f32 %v1649_v62, %v1617_v1 }
 0x3a1   : > { %v1669_v0 = vpop.f32.mrf.mxu3 }
 0x3a2   : > { %v1696_v2 = vpop.f32.mrf.mxu0  ;;  %v1716_v3 = vpop.f32.mrf.mxu1  ;;  %v1673_v6 = vadd.f32 %v1669_v0, %v1618_v4 }
 0x3a3   : > { %v1719_v9 = vadd.f32 %v1696_v2, %v1672_v5 }
 0x3a4   : > { %v1720_v11 = vadd.f32 %v1716_v3, %v1673_v6 }
 0x3a7   : > { %v1751_v8 = vpop.f32.mrf.mxu2 }
 0x3a8   : > { %v1774_v12 = vadd.f32 %v1751_v8, %v1719_v9 }
 0x3a9   : > { %v1771_v10 = vpop.f32.mrf.mxu3 }
 0x3aa   : > { %v1808_v13 = vpop.f32.mrf.mxu0  ;;  %v1775_v15 = vadd.f32 %v1771_v10, %v1720_v11 }
 0x3ab   : > { %v1828_v14 = vpop.f32.mrf.mxu1  ;;  %v1831_v7 = vadd.f32 %v1808_v13, %v1774_v12 }
 0x3ac   : > { %v1832_v17 = vadd.f32 %v1828_v14, %v1775_v15 }
 0x3af   : > { %v1855_v16 = vpop.f32.mrf.mxu2 }
 0x3b0   : > { %v1878_v18 = vadd.f32 %v1855_v16, %v1831_v7 }
 0x3b1   : > { %v1875_v20 = vpop.f32.mrf.mxu3 }
 0x3b2   : > { %v1879_v22 = vadd.f32 %v1875_v20, %v1832_v17  ;;  %v1910_v19 = vpop.f32.mrf.mxu0 }
 0x3b3   : > { %v1930_v25 = vpop.f32.mrf.mxu1  ;;  %v1933_v23 = vadd.f32 %v1910_v19, %v1878_v18 }
 0x3b4   : > { %v1934_v24 = vadd.f32 %v1930_v25, %v1879_v22 }
 0x3b5   : > { %v1941_v26 = vadd.f32 %v1939_v21, %v1933_v23 }
 0x3b6   : > { %v1942_v27 = vadd.f32 %v1939_v21, %v1934_v24 }
 0x3b7   : > { %v1943_v28 = vmax.f32 %v1941_v26, 0.0 }
 0x3b8   : > { %v1944_v29 = vmax.f32 %v1942_v27, 0.0 }
 0x3b9   : > { %1945 = vst [vmem:[%s286_s17] sm:$0xff] %v1943_v28 }
 0x3ba   : > { %1946 = vst [vmem:[%s286_s17 + $0x8] sm:$0xff] %v1944_v29 }
 0x3bb   : > { %2257 = shalt.err (!%p2254_p3)
}
 0x3bc   : > { %2183 = dma.vmem_to_hbm [thread:$0]  (%p2377_p5), %s1962_s21, 256, %s1964_s18, %s1948_s28  }
 0x3bd PF: > { %p2189_p4 = scmp.ge.s32.totalorder %s2292_s27, 2  ;;  %s1975_s8 = sand.u32 1, %s2280_s24  }
 0x3be   : > { %s1976_s14 = scalar_lea.sflag [#allocation3], %s1975_s8 }
 0x3bf   : > { %p2186_p7 = pnand %p2189_p4, %p2381_p6 }
 0x3c1   : > { %p2187_p8 = pneg %p2186_p7 }
 0x3c3   : > { %2275 = dma.done.wait (%p2187_p8), %s1976_s14, 256  }
 0x3c4   : > { %2277 = vsyncadd (%p2187_p8), %s1976_s14, 4294967040  ;;  %p17_p9 = scmp.ge.s32.totalorder %s2364_s30, 4   ;;  %s2832_s24 = smov %s2284_s25 }
 0x3c5   : > { %s2833_s25 = smov %s2288_s26  ;;  %s2834_s26 = smov %s2375_s10 }
 0x3c6   : > { %s2835_s27 = smov %s2364_s30  ;;  %19 = sbr.rel (!%p17_p9) target bundleno = 3 (0x3), region = 110 }
 0x3cb   :  { %1982 = vsyncpa [#allocation3], 1 }
 0x3cc   :  { %1984 = vsyncpa [#allocation3 + $0x1], 1 }

</bundles_post_ra>
